<compile_context>
chip_gen: v7x
topology: tpu7x:2x2x1
jax: 0.10.0
libtpu: 0.0.40
codegen_flags: <defaults>
</compile_context>

<pallas_src>
import functools

import jax
import jax.numpy as jnp
from jax import lax
from jax.experimental import pallas as pl
from jax.experimental.pallas import tpu as pltpu


SUBLANE = 8        # f32 sublane tile
LANE = 128         # lane tile
MAX_B_TILE = 256   # max MXU M rows per batch tile


def _round_up(x, m):
    return (x + m - 1) // m * m


# --------------------------- generation-aware sizing ---------------------------

def _tpu_vmem_profile():
    """Returns (vmem_budget_bytes, two_tensorcores) for the current TPU."""
    try:
        cap = int(pltpu.get_tpu_info().vmem_capacity_bytes)
    except Exception:
        cap = 64 << 20
    if cap <= (96 << 20):
        # v7x-class: 64 MiB VMEM per TensorCore, 2 TCs/chip.  Leave ~16 MiB of
        # headroom for Mosaic internal scratch.
        return 48 << 20, True
    # v5e/v6e-class: 128 MiB VMEM, single TensorCore.
    return 100 << 20, False


def _choose_batch_tiling(b_pad8, two_cores):
    """Pick (b_tile, n_btiles) with b_tile a multiple of 8 (16 when tiled)."""
    n_tiles = pl.cdiv(b_pad8, MAX_B_TILE)
    if two_cores and b_pad8 >= 32:
        # Keep >=2 batch tiles so the "parallel" grid axis shards across TCs.
        n_tiles = max(n_tiles, 2)
    if n_tiles == 1:
        return b_pad8, 1
    # Multi-tile: keep the bf16 x block's sublane dim a multiple of 16.
    b_tile = min(_round_up(pl.cdiv(b_pad8, n_tiles), 16), MAX_B_TILE)
    n_tiles = pl.cdiv(b_pad8, b_tile)
    return b_tile, n_tiles


def _choose_time_chunk(T, b_tile, d_pad, vmem_budget):
    """Pick t_chunk and vmem_limit_bytes from a rough VMEM model."""
    # Resident bf16 weights are counted x2 (double-buffered despite constant
    # index_map), per the review's undercounting concern.
    fixed = (2 * (2 * d_pad * 4 * d_pad) * 2      # W_ih + W_hh (bf16) x 2 bufs
             + 2 * 4 * d_pad * 4                  # bias (f32) x 2 bufs
             + 2 * b_tile * d_pad * 4             # h/c state scratch (f32)
             + 2 * 2 * b_tile * d_pad * 4)        # final h/c out blocks x 2 bufs
    per_t = (b_tile * 4 * d_pad * 4               # xw scratch (f32)
             + 2 * b_tile * d_pad * 2             # x chunk (bf16) x 2 bufs
             + 2 * b_tile * d_pad * 4)            # y chunk (f32) x 2 bufs
    avail = vmem_budget - fixed
    t_chunk = max(8, avail // per_t) if avail > 0 else 8
    t_chunk = int(min(128, t_chunk, max(T, 1)))
    if t_chunk >= 8:
        t_chunk -= t_chunk % 8
    est = fixed + per_t * t_chunk
    vmem_limit = int(min(max(int(est * 1.25) + (4 << 20), 16 << 20), vmem_budget))
    return t_chunk, vmem_limit


# ----------------------------- Pallas LSTM kernel ------------------------------

def lstm_chunk_kernel(x_ref, wih_ref, whh_ref, b_ref,
                      y_ref, hT_ref, cT_ref,
                      h_scr, c_scr, xw_scr,
                      *, t_chunk, seq_len, unroll):
    """Process one (batch_tile, time_chunk) block of the LSTM.

    Grid axes: (batch_tile "parallel", time_chunk "arbitrary").
    Hidden/cell state carried in f32 VMEM scratch across time chunks.
    Gate order in the padded weights: i, f, o (sigmoid, contiguous), g (tanh).
    Matmuls are bf16 x bf16 -> f32 accumulate; elementwise math stays f32.
    """
    c_idx = pl.program_id(1)
    n_chunks = pl.num_programs(1)

    b_tile, d_pad = h_scr.shape

    @pl.when(c_idx == 0)
    def _():
        h_scr[...] = jnp.zeros_like(h_scr)
        c_scr[...] = jnp.zeros_like(c_scr)

    # ---- Hoisted input projection: one MXU-shaped bf16 GEMM per chunk --------
    x_flat = x_ref[...].reshape(t_chunk * b_tile, d_pad)          # bf16
    xw = jnp.dot(x_flat, wih_ref[...], preferred_element_type=jnp.float32)
    xw = xw + b_ref[...]                                          # f32 bias
    xw_scr[...] = xw.reshape(t_chunk, b_tile, 4 * d_pad)

    # ---- Sequential recurrence over the chunk: only h @ W_hh per step --------
    def step(t, carry):
        h = h_scr[...]
        c = c_scr[...]
        gates = xw_scr[t] + jnp.dot(h.astype(whh_ref.dtype), whh_ref[...],
                                    preferred_element_type=jnp.float32)
        # Gates reordered to [i, f, o, g]: one sigmoid over a contiguous
        # 3*d_pad slice, one tanh over the last block (d_pad % 128 == 0 so
        # every slice boundary is vreg-aligned).
        sig = jax.nn.sigmoid(gates[:, :3 * d_pad])
        i_g = sig[:, 0 * d_pad:1 * d_pad]
        f_g = sig[:, 1 * d_pad:2 * d_pad]
        o_g = sig[:, 2 * d_pad:3 * d_pad]
        g_g = jnp.tanh(gates[:, 3 * d_pad:4 * d_pad])

        c_new = f_g * c + i_g * g_g
        h_new = o_g * jnp.tanh(c_new)

        if seq_len % t_chunk != 0:
            # Last chunk may extend past the true sequence length; freeze state
            # for out-of-range timesteps (only traced when T % t_chunk != 0).
            # The OOB rows of the y block are discarded by Pallas.
            valid = (c_idx * t_chunk + t) < seq_len
            h_new = jnp.where(valid, h_new, h)
            c_new = jnp.where(valid, c_new, c)

        h_scr[...] = h_new
        c_scr[...] = c_new
        y_ref[t] = h_new.astype(y_ref.dtype)   # lane-dense, unmasked store
        return carry

    lax.fori_loop(0, t_chunk, step, 0, unroll=unroll)

    # Final-state outputs written once, on the last time chunk.
    @pl.when(c_idx == n_chunks - 1)
    def _():
        hT_ref[0] = h_scr[...].astype(hT_ref.dtype)
        cT_ref[0] = c_scr[...].astype(cT_ref.dtype)


def lstm_forward(x, w_ih, w_hh, bias, seq_len, *, b_tile, t_chunk, vmem_limit):
    """x: (T, B_pad, D_pad) time-major bf16, B_pad % b_tile == 0, D_pad % 128 == 0.

    w_ih/w_hh: (D_pad, 4*D_pad) bf16, pre-transposed, gate blocks [i,f,o,g].
    bias: (1, 4*D_pad) f32.  Returns (y[T,B_pad,D_pad], h[1,...], c[1,...]) f32.
    """
    T, B_pad, D_pad = x.shape
    assert B_pad % b_tile == 0
    n_chunks = pl.cdiv(T, t_chunk)
    n_btiles = B_pad // b_tile
    out_dtype = jnp.float32
    # TODO(synk): on bandwidth-bound v5e, emit y in bf16 to halve its HBM stream.

    if t_chunk % 8 == 0:
        unroll = 8          # fixed partial unroll: LLO visibility, bounded vregs
    elif t_chunk % 4 == 0:
        unroll = 4
    else:
        unroll = True       # tiny chunk: full unroll

    kernel = functools.partial(lstm_chunk_kernel, t_chunk=t_chunk,
                               seq_len=seq_len, unroll=unroll)

    grid_spec = pltpu.PrefetchScalarGridSpec(
        num_scalar_prefetch=0,
        grid=(n_btiles, n_chunks),
        in_specs=[
            pl.BlockSpec((t_chunk, b_tile, D_pad), lambda b, c: (c, b, 0)),   # x (bf16)
            pl.BlockSpec((D_pad, 4 * D_pad), lambda b, c: (0, 0)),            # W_ih (bf16, resident)
            pl.BlockSpec((D_pad, 4 * D_pad), lambda b, c: (0, 0)),            # W_hh (bf16, resident)
            pl.BlockSpec((1, 4 * D_pad), lambda b, c: (0, 0)),                # bias (f32)
        ],
        out_specs=[
            pl.BlockSpec((t_chunk, b_tile, D_pad), lambda b, c: (c, b, 0)),   # y
            pl.BlockSpec((1, b_tile, D_pad), lambda b, c: (0, b, 0)),         # final h
            pl.BlockSpec((1, b_tile, D_pad), lambda b, c: (0, b, 0)),         # final c
        ],
        scratch_shapes=[
            pltpu.VMEM((b_tile, D_pad), jnp.float32),                 # h state
            pltpu.VMEM((b_tile, D_pad), jnp.float32),                 # c state
            pltpu.VMEM((t_chunk, b_tile, 4 * D_pad), jnp.float32),    # hoisted x@W_ih
        ],
    )

    y, hT, cT = pl.pallas_call(
        kernel,
        out_shape=(
            jax.ShapeDtypeStruct((T, B_pad, D_pad), out_dtype),
            jax.ShapeDtypeStruct((1, B_pad, D_pad), out_dtype),
            jax.ShapeDtypeStruct((1, B_pad, D_pad), out_dtype),
        ),
        grid_spec=grid_spec,
        compiler_params=pltpu.CompilerParams(
            dimension_semantics=("parallel", "arbitrary"),
            vmem_limit_bytes=vmem_limit),
    )(x, w_ih, w_hh, bias)
    return y, hT, cT


# ------------------------------ Encoder wrapper --------------------------------

_GATE_PERM = (0, 1, 3, 2)   # PyTorch [i, f, g, o] -> kernel [i, f, o, g]


def _pad_gate_weight(w_t, d, d_pad, dtype):
    """(d, 4d) transposed weight -> (d_pad, 4*d_pad) bf16, gates [i,f,o,g]."""
    w = w_t.reshape(d, 4, d)[:, _GATE_PERM, :]
    w = jnp.pad(w, ((0, d_pad - d), (0, 0), (0, d_pad - d)))
    return w.reshape(d_pad, 4 * d_pad).astype(dtype)


def _pad_gate_bias(b, d, d_pad):
    b = b.reshape(4, d)[_GATE_PERM, :]
    b = jnp.pad(b, ((0, 0), (0, d_pad - d)))
    return b.reshape(1, 4 * d_pad)          # kept f32 (added after f32 accumulate)


class LSTMEncoderPallas:
    """JAX/Pallas port of LSTMEncoder (num_layers=1, eval mode)."""

    def __init__(self, num_embeddings, embed_dim, padding_idx, key):
        self.embed_dim = embed_dim
        self.padding_idx = padding_idx
        self.num_layers = 1

        D = embed_dim
        D_pad = _round_up(D, LANE)
        self.d_pad = D_pad

        self.vmem_budget, self.two_cores = _tpu_vmem_profile()

        k_emb, k_wi, k_wh, k_bi, k_bh = jax.random.split(key, 5)

        emb = jax.random.uniform(k_emb, (num_embeddings, D),
                                 minval=-0.1, maxval=0.1, dtype=jnp.float32)
        self.embed_weight = emb.at[padding_idx].set(0.0)          # (V, D) f32 (reference)
        # Lane-dense bf16 table fed to the kernel's x stream (halves x HBM traffic).
        self.embed_padded = jnp.pad(self.embed_weight,
                                    ((0, 0), (0, D_pad - D))).astype(jnp.bfloat16)

        # PyTorch nn.LSTM params ~ U(-0.1, 0.1): weight_ih/hh (4D, D), biases (4D,)
        w_ih = jax.random.uniform(k_wi, (4 * D, D), minval=-0.1, maxval=0.1,
                                  dtype=jnp.float32)
        w_hh = jax.random.uniform(k_wh, (4 * D, D), minval=-0.1, maxval=0.1,
                                  dtype=jnp.float32)
        b_ih = jax.random.uniform(k_bi, (4 * D,), minval=-0.1, maxval=0.1,
                                  dtype=jnp.float32)
        b_hh = jax.random.uniform(k_bh, (4 * D,), minval=-0.1, maxval=0.1,
                                  dtype=jnp.float32)

        # Unpadded, PyTorch-gate-order versions (for the pure-JAX reference).
        self.w_ih_T = jnp.transpose(w_ih)                 # (D, 4D)
        self.w_hh_T = jnp.transpose(w_hh)                 # (D, 4D)
        self.bias_ref = (b_ih + b_hh).reshape(1, 4 * D)   # (1, 4D)

        # Kernel-side: lane-dense zero padding (padded lanes of h/c stay exactly 0),
        # gate blocks reordered to [i, f, o, g], matmul operands cast to bf16.
        self.w_ih_pad = _pad_gate_weight(self.w_ih_T, D, D_pad, jnp.bfloat16)
        self.w_hh_pad = _pad_gate_weight(self.w_hh_T, D, D_pad, jnp.bfloat16)
        self.bias_pad = _pad_gate_bias(b_ih + b_hh, D, D_pad)     # (1, 4*D_pad) f32

    def __call__(self, src_tokens, src_lengths=None):
        # src_tokens: (bsz, seqlen) int32; src_lengths unused (matches reference).
        bsz, seqlen = src_tokens.shape
        D, D_pad = self.embed_dim, self.d_pad

        # Embedding gather directly in time-major order (no (B,T,D) transpose copy).
        x = jnp.take(self.embed_padded, src_tokens.T, axis=0)    # (T, B, D_pad) bf16
        # dropout_in: identity in eval mode.

        b_pad8 = _round_up(bsz, SUBLANE)
        b_tile, n_btiles = _choose_batch_tiling(b_pad8, self.two_cores)
        B_pad = b_tile * n_btiles
        if B_pad > bsz:
            x = jnp.pad(x, ((0, 0), (0, B_pad - bsz), (0, 0)))

        t_chunk, vmem_limit = _choose_time_chunk(seqlen, b_tile, D_pad,
                                                 self.vmem_budget)

        y, hT, cT = lstm_forward(x, self.w_ih_pad, self.w_hh_pad, self.bias_pad,
                                 seqlen, b_tile=b_tile, t_chunk=t_chunk,
                                 vmem_limit=vmem_limit)
        # dropout_out: identity in eval mode.

        y = y[:, :bsz, :D]
        hT = hT[:, :bsz, :D]
        cT = cT[:, :bsz, :D]
        assert y.shape == (seqlen, bsz, D)
        assert hT.shape == (self.num_layers, bsz, D)
        assert cT.shape == (self.num_layers, bsz, D)
        return y, hT, cT


# ----------------------------- Reference (pure JAX) ----------------------------

def lstm_reference(x, w_ih_T, w_hh_T, bias):
    T, B, D = x.shape

    def step(carry, x_t):
        h, c = carry
        gates = x_t @ w_ih_T + h @ w_hh_T + bias
        i = jax.nn.sigmoid(gates[:, 0 * D:1 * D])
        f = jax.nn.sigmoid(gates[:, 1 * D:2 * D])
        g = jnp.tanh(gates[:, 2 * D:3 * D])
        o = jax.nn.sigmoid(gates[:, 3 * D:4 * D])
        c = f * c + i * g
        h = o * jnp.tanh(c)
        return (h, c), h

    h0 = jnp.zeros((B, D), jnp.float32)
    c0 = jnp.zeros((B, D), jnp.float32)
    (hT, cT), ys = jax.lax.scan(step, (h0, c0), x)
    return ys, hT[None], cT[None]


# ----------------------------------- main ---------------------------------------

if __name__ == "__main__":
    key = jax.random.PRNGKey(0)
    k_tok, k_params = jax.random.split(key)

    vocab_size = 16        # len(dictionary)
    padding_idx = 1        # dictionary.pad()
    embed_dim = 32
    bsz, seqlen = 2, 8

    src_tokens = jax.random.randint(k_tok, (bsz, seqlen), 0, vocab_size,
                                    dtype=jnp.int32)
    src_lengths = jnp.full((bsz,), seqlen, dtype=jnp.int32)

    enc = LSTMEncoderPallas(vocab_size, embed_dim, padding_idx, k_params)

    y, final_h, final_c = enc(src_tokens, src_lengths)
    jax.block_until_ready((y, final_h, final_c))

    # Correctness check against a pure-JAX f32 reference at the unpadded size.
    # Tolerance accounts for bf16 MXU operands (f32 accumulation) in the kernel.
    x_emb = jnp.take(enc.embed_weight, src_tokens.T, axis=0)   # (T, B, D) f32
    y_ref, h_ref, c_ref = lstm_reference(x_emb, enc.w_ih_T, enc.w_hh_T,
                                         enc.bias_ref)
    assert jnp.allclose(y, y_ref, atol=2e-2), "output mismatch"
    assert jnp.allclose(final_h, h_ref, atol=2e-2), "final hidden mismatch"
    assert jnp.allclose(final_c, c_ref, atol=2e-2), "final cell mismatch"

    print("KERNEL_OK")
</pallas_src>

<mosaic_0001>
module attributes {stable_mosaic.version = 11 : i64} {
  func.func @lstm_chunk_kernel(%arg0: i32, %arg1: i32, %arg2: memref<8x8x128xbf16, #tpu.memory_space<vmem>>, %arg3: memref<128x512xbf16, #tpu.memory_space<vmem>>, %arg4: memref<128x512xbf16, #tpu.memory_space<vmem>>, %arg5: memref<1x512xf32, #tpu.memory_space<vmem>>, %arg6: memref<8x8x128xf32, #tpu.memory_space<vmem>>, %arg7: memref<1x8x128xf32, #tpu.memory_space<vmem>>, %arg8: memref<1x8x128xf32, #tpu.memory_space<vmem>>, %arg9: memref<8x128xf32, #tpu.memory_space<vmem>>, %arg10: memref<8x128xf32, #tpu.memory_space<vmem>>, %arg11: memref<8x8x512xf32, #tpu.memory_space<vmem>>) attributes {dimension_semantics = [#tpu.dimension_semantics<parallel>, #tpu.dimension_semantics<arbitrary>], iteration_bounds = array<i64: 1, 1>, scalar_prefetch = 0 : i64, scratch_operands = 3 : i64, tpu.core_type = #tpu.core_type<tc>, window_params = [{transform_indices = @transform_0, window_bounds = array<i64: 8, 8, 128>}, {pipeline_mode = #tpu.pipeline_mode<synchronous>, transform_indices = @transform_1, window_bounds = array<i64: 128, 512>}, {pipeline_mode = #tpu.pipeline_mode<synchronous>, transform_indices = @transform_2, window_bounds = array<i64: 128, 512>}, {pipeline_mode = #tpu.pipeline_mode<synchronous>, transform_indices = @transform_3, window_bounds = array<i64: 1, 512>}, {transform_indices = @transform_4, window_bounds = array<i64: 8, 8, 128>}, {transform_indices = @transform_5, window_bounds = array<i64: 1, 8, 128>}, {transform_indices = @transform_6, window_bounds = array<i64: 1, 8, 128>}]} {
    %c0_i32 = arith.constant 0 : i32
    %0 = arith.cmpi eq, %arg1, %c0_i32 : i32
    %1 = arith.extui %0 : i1 to i32
    %c0_i32_0 = arith.constant 0 : i32
    %2 = arith.cmpi ne, %1, %c0_i32_0 : i32
    scf.if %2 {
      %cst_141 = arith.constant 0.000000e+00 : f32
      %263 = vector.broadcast %cst_141 : f32 to vector<8x128xf32>
      %c0_142 = arith.constant 0 : index
      %c0_143 = arith.constant 0 : index
      %264 = vector.load %arg9[%c0_142, %c0_143] : memref<8x128xf32, #tpu.memory_space<vmem>>, vector<8x128xf32>
      tpu.vector_store %arg9[%c0_142, %c0_143], %263 {strides = array<i32>} : memref<8x128xf32, #tpu.memory_space<vmem>>, vector<8x128xf32>,
      %cst_144 = arith.constant 0.000000e+00 : f32
      %265 = vector.broadcast %cst_144 : f32 to vector<8x128xf32>
      %c0_145 = arith.constant 0 : index
      %c0_146 = arith.constant 0 : index
      %266 = vector.load %arg10[%c0_145, %c0_146] : memref<8x128xf32, #tpu.memory_space<vmem>>, vector<8x128xf32>
      tpu.vector_store %arg10[%c0_145, %c0_146], %265 {strides = array<i32>} : memref<8x128xf32, #tpu.memory_space<vmem>>, vector<8x128xf32>,
    } else {
    }
    %c0 = arith.constant 0 : index
    %c0_1 = arith.constant 0 : index
    %c0_2 = arith.constant 0 : index
    %3 = vector.load %arg2[%c0, %c0_1, %c0_2] : memref<8x8x128xbf16, #tpu.memory_space<vmem>>, vector<8x8x128xbf16>
    %4 = vector.shape_cast %3 : vector<8x8x128xbf16> to vector<64x128xbf16>
    %c0_3 = arith.constant 0 : index
    %c0_4 = arith.constant 0 : index
    %5 = vector.load %arg3[%c0_3, %c0_4] : memref<128x512xbf16, #tpu.memory_space<vmem>>, vector<128x512xbf16>
    %cst = arith.constant dense<0.000000e+00> : vector<64x512xf32>
    %6 = tpu.matmul %4, %5, %cst {dimension_numbers = #tpu.dot_dimension_numbers<[1], [0], [0], [1], [0, 0, 1, 1], [], []>} : vector<64x128xbf16>, vector<128x512xbf16>, vector<64x512xf32> -> vector<64x512xf32>
    %c0_5 = arith.constant 0 : index
    %c0_6 = arith.constant 0 : index
    %7 = vector.load %arg5[%c0_5, %c0_6] : memref<1x512xf32, #tpu.memory_space<vmem>>, vector<1x512xf32>
    %8 = vector.broadcast %7 : vector<1x512xf32> to vector<64x512xf32>
    %9 = arith.addf %6, %8 : vector<64x512xf32>
    %10 = vector.shape_cast %9 : vector<64x512xf32> to vector<8x8x512xf32>
    %c0_7 = arith.constant 0 : index
    %c0_8 = arith.constant 0 : index
    %c0_9 = arith.constant 0 : index
    %11 = vector.load %arg11[%c0_7, %c0_8, %c0_9] : memref<8x8x512xf32, #tpu.memory_space<vmem>>, vector<8x8x512xf32>
    tpu.vector_store %arg11[%c0_7, %c0_8, %c0_9], %10 {strides = array<i32>} : memref<8x8x512xf32, #tpu.memory_space<vmem>>, vector<8x8x512xf32>,
    %c0_i32_10 = arith.constant 0 : i32
    %c0_11 = arith.constant 0 : index
    %c0_12 = arith.constant 0 : index
    %12 = vector.load %arg9[%c0_11, %c0_12] : memref<8x128xf32, #tpu.memory_space<vmem>>, vector<8x128xf32>
    %c0_13 = arith.constant 0 : index
    %c0_14 = arith.constant 0 : index
    %13 = vector.load %arg10[%c0_13, %c0_14] : memref<8x128xf32, #tpu.memory_space<vmem>>, vector<8x128xf32>
    %14 = arith.index_cast %c0_i32_10 : i32 to index
    %c0_15 = arith.constant 0 : index
    %c0_16 = arith.constant 0 : index
    %15 = vector.load %arg11[%14, %c0_15, %c0_16] : memref<8x8x512xf32, #tpu.memory_space<vmem>>, vector<1x8x512xf32>
    %16 = vector.shape_cast %15 : vector<1x8x512xf32> to vector<8x512xf32>
    %17 = arith.truncf %12 : vector<8x128xf32> to vector<8x128xbf16>
    %c0_17 = arith.constant 0 : index
    %c0_18 = arith.constant 0 : index
    %18 = vector.load %arg4[%c0_17, %c0_18] : memref<128x512xbf16, #tpu.memory_space<vmem>>, vector<128x512xbf16>
    %cst_19 = arith.constant dense<0.000000e+00> : vector<8x512xf32>
    %19 = tpu.matmul %17, %18, %cst_19 {dimension_numbers = #tpu.dot_dimension_numbers<[1], [0], [0], [1], [0, 0, 1, 1], [], []>} : vector<8x128xbf16>, vector<128x512xbf16>, vector<8x512xf32> -> vector<8x512xf32>
    %20 = arith.addf %16, %19 : vector<8x512xf32>
    %21 = vector.extract_strided_slice %20 {offsets = [0, 0], sizes = [8, 384], strides = [1, 1]} : vector<8x512xf32> to vector<8x384xf32>
    %22 = arith.negf %21 : vector<8x384xf32>
    %23 = math.exp %22 : vector<8x384xf32>
    %cst_20 = arith.constant 1.000000e+00 : f32
    %24 = vector.broadcast %cst_20 : f32 to vector<8x384xf32>
    %25 = arith.addf %24, %23 : vector<8x384xf32>
    %26 = arith.divf %24, %25 : vector<8x384xf32>
    %27 = vector.extract_strided_slice %26 {offsets = [0, 0], sizes = [8, 128], strides = [1, 1]} : vector<8x384xf32> to vector<8x128xf32>
    %28 = vector.extract_strided_slice %26 {offsets = [0, 128], sizes = [8, 128], strides = [1, 1]} : vector<8x384xf32> to vector<8x128xf32>
    %29 = vector.extract_strided_slice %26 {offsets = [0, 256], sizes = [8, 128], strides = [1, 1]} : vector<8x384xf32> to vector<8x128xf32>
    %30 = vector.extract_strided_slice %20 {offsets = [0, 384], sizes = [8, 128], strides = [1, 1]} : vector<8x512xf32> to vector<8x128xf32>
    %31 = math.tanh %30 : vector<8x128xf32>
    %32 = arith.mulf %28, %13 : vector<8x128xf32>
    %33 = arith.mulf %27, %31 : vector<8x128xf32>
    %34 = arith.addf %32, %33 : vector<8x128xf32>
    %35 = math.tanh %34 : vector<8x128xf32>
    %36 = arith.mulf %29, %35 : vector<8x128xf32>
    %c0_21 = arith.constant 0 : index
    %c0_22 = arith.constant 0 : index
    %37 = vector.load %arg9[%c0_21, %c0_22] : memref<8x128xf32, #tpu.memory_space<vmem>>, vector<8x128xf32>
    tpu.vector_store %arg9[%c0_21, %c0_22], %36 {strides = array<i32>} : memref<8x128xf32, #tpu.memory_space<vmem>>, vector<8x128xf32>,
    %c0_23 = arith.constant 0 : index
    %c0_24 = arith.constant 0 : index
    %38 = vector.load %arg10[%c0_23, %c0_24] : memref<8x128xf32, #tpu.memory_space<vmem>>, vector<8x128xf32>
    tpu.vector_store %arg10[%c0_23, %c0_24], %34 {strides = array<i32>} : memref<8x128xf32, #tpu.memory_space<vmem>>, vector<8x128xf32>,
    %39 = arith.index_cast %c0_i32_10 : i32 to index
    %c0_25 = arith.constant 0 : index
    %c0_26 = arith.constant 0 : index
    %40 = vector.load %arg6[%39, %c0_25, %c0_26] : memref<8x8x128xf32, #tpu.memory_space<vmem>>, vector<1x8x128xf32>
    %41 = vector.shape_cast %40 : vector<1x8x128xf32> to vector<8x128xf32>
    %42 = vector.shape_cast %36 : vector<8x128xf32> to vector<1x8x128xf32>
    tpu.vector_store %arg6[%39, %c0_25, %c0_26], %42 {strides = array<i32>} : memref<8x8x128xf32, #tpu.memory_space<vmem>>, vector<1x8x128xf32>,
    %c1_i32 = arith.constant 1 : i32
    %c0_27 = arith.constant 0 : index
    %c0_28 = arith.constant 0 : index
    %43 = vector.load %arg9[%c0_27, %c0_28] : memref<8x128xf32, #tpu.memory_space<vmem>>, vector<8x128xf32>
    %c0_29 = arith.constant 0 : index
    %c0_30 = arith.constant 0 : index
    %44 = vector.load %arg10[%c0_29, %c0_30] : memref<8x128xf32, #tpu.memory_space<vmem>>, vector<8x128xf32>
    %45 = arith.index_cast %c1_i32 : i32 to index
    %c0_31 = arith.constant 0 : index
    %c0_32 = arith.constant 0 : index
    %46 = vector.load %arg11[%45, %c0_31, %c0_32] : memref<8x8x512xf32, #tpu.memory_space<vmem>>, vector<1x8x512xf32>
    %47 = vector.shape_cast %46 : vector<1x8x512xf32> to vector<8x512xf32>
    %48 = arith.truncf %43 : vector<8x128xf32> to vector<8x128xbf16>
    %c0_33 = arith.constant 0 : index
    %c0_34 = arith.constant 0 : index
    %49 = vector.load %arg4[%c0_33, %c0_34] : memref<128x512xbf16, #tpu.memory_space<vmem>>, vector<128x512xbf16>
    %cst_35 = arith.constant dense<0.000000e+00> : vector<8x512xf32>
    %50 = tpu.matmul %48, %49, %cst_35 {dimension_numbers = #tpu.dot_dimension_numbers<[1], [0], [0], [1], [0, 0, 1, 1], [], []>} : vector<8x128xbf16>, vector<128x512xbf16>, vector<8x512xf32> -> vector<8x512xf32>
    %51 = arith.addf %47, %50 : vector<8x512xf32>
    %52 = vector.extract_strided_slice %51 {offsets = [0, 0], sizes = [8, 384], strides = [1, 1]} : vector<8x512xf32> to vector<8x384xf32>
    %53 = arith.negf %52 : vector<8x384xf32>
    %54 = math.exp %53 : vector<8x384xf32>
    %cst_36 = arith.constant 1.000000e+00 : f32
    %55 = vector.broadcast %cst_36 : f32 to vector<8x384xf32>
    %56 = arith.addf %55, %54 : vector<8x384xf32>
    %57 = arith.divf %55, %56 : vector<8x384xf32>
    %58 = vector.extract_strided_slice %57 {offsets = [0, 0], sizes = [8, 128], strides = [1, 1]} : vector<8x384xf32> to vector<8x128xf32>
    %59 = vector.extract_strided_slice %57 {offsets = [0, 128], sizes = [8, 128], strides = [1, 1]} : vector<8x384xf32> to vector<8x128xf32>
    %60 = vector.extract_strided_slice %57 {offsets = [0, 256], sizes = [8, 128], strides = [1, 1]} : vector<8x384xf32> to vector<8x128xf32>
    %61 = vector.extract_strided_slice %51 {offsets = [0, 384], sizes = [8, 128], strides = [1, 1]} : vector<8x512xf32> to vector<8x128xf32>
    %62 = math.tanh %61 : vector<8x128xf32>
    %63 = arith.mulf %59, %44 : vector<8x128xf32>
    %64 = arith.mulf %58, %62 : vector<8x128xf32>
    %65 = arith.addf %63, %64 : vector<8x128xf32>
    %66 = math.tanh %65 : vector<8x128xf32>
    %67 = arith.mulf %60, %66 : vector<8x128xf32>
    %c0_37 = arith.constant 0 : index
    %c0_38 = arith.constant 0 : index
    %68 = vector.load %arg9[%c0_37, %c0_38] : memref<8x128xf32, #tpu.memory_space<vmem>>, vector<8x128xf32>
    tpu.vector_store %arg9[%c0_37, %c0_38], %67 {strides = array<i32>} : memref<8x128xf32, #tpu.memory_space<vmem>>, vector<8x128xf32>,
    %c0_39 = arith.constant 0 : index
    %c0_40 = arith.constant 0 : index
    %69 = vector.load %arg10[%c0_39, %c0_40] : memref<8x128xf32, #tpu.memory_space<vmem>>, vector<8x128xf32>
    tpu.vector_store %arg10[%c0_39, %c0_40], %65 {strides = array<i32>} : memref<8x128xf32, #tpu.memory_space<vmem>>, vector<8x128xf32>,
    %70 = arith.index_cast %c1_i32 : i32 to index
    %c0_41 = arith.constant 0 : index
    %c0_42 = arith.constant 0 : index
    %71 = vector.load %arg6[%70, %c0_41, %c0_42] : memref<8x8x128xf32, #tpu.memory_space<vmem>>, vector<1x8x128xf32>
    %72 = vector.shape_cast %71 : vector<1x8x128xf32> to vector<8x128xf32>
    %73 = vector.shape_cast %67 : vector<8x128xf32> to vector<1x8x128xf32>
    tpu.vector_store %arg6[%70, %c0_41, %c0_42], %73 {strides = array<i32>} : memref<8x8x128xf32, #tpu.memory_space<vmem>>, vector<1x8x128xf32>,
    %c2_i32 = arith.constant 2 : i32
    %c0_43 = arith.constant 0 : index
    %c0_44 = arith.constant 0 : index
    %74 = vector.load %arg9[%c0_43, %c0_44] : memref<8x128xf32, #tpu.memory_space<vmem>>, vector<8x128xf32>
    %c0_45 = arith.constant 0 : index
    %c0_46 = arith.constant 0 : index
    %75 = vector.load %arg10[%c0_45, %c0_46] : memref<8x128xf32, #tpu.memory_space<vmem>>, vector<8x128xf32>
    %76 = arith.index_cast %c2_i32 : i32 to index
    %c0_47 = arith.constant 0 : index
    %c0_48 = arith.constant 0 : index
    %77 = vector.load %arg11[%76, %c0_47, %c0_48] : memref<8x8x512xf32, #tpu.memory_space<vmem>>, vector<1x8x512xf32>
    %78 = vector.shape_cast %77 : vector<1x8x512xf32> to vector<8x512xf32>
    %79 = arith.truncf %74 : vector<8x128xf32> to vector<8x128xbf16>
    %c0_49 = arith.constant 0 : index
    %c0_50 = arith.constant 0 : index
    %80 = vector.load %arg4[%c0_49, %c0_50] : memref<128x512xbf16, #tpu.memory_space<vmem>>, vector<128x512xbf16>
    %cst_51 = arith.constant dense<0.000000e+00> : vector<8x512xf32>
    %81 = tpu.matmul %79, %80, %cst_51 {dimension_numbers = #tpu.dot_dimension_numbers<[1], [0], [0], [1], [0, 0, 1, 1], [], []>} : vector<8x128xbf16>, vector<128x512xbf16>, vector<8x512xf32> -> vector<8x512xf32>
    %82 = arith.addf %78, %81 : vector<8x512xf32>
    %83 = vector.extract_strided_slice %82 {offsets = [0, 0], sizes = [8, 384], strides = [1, 1]} : vector<8x512xf32> to vector<8x384xf32>
    %84 = arith.negf %83 : vector<8x384xf32>
    %85 = math.exp %84 : vector<8x384xf32>
    %cst_52 = arith.constant 1.000000e+00 : f32
    %86 = vector.broadcast %cst_52 : f32 to vector<8x384xf32>
    %87 = arith.addf %86, %85 : vector<8x384xf32>
    %88 = arith.divf %86, %87 : vector<8x384xf32>
    %89 = vector.extract_strided_slice %88 {offsets = [0, 0], sizes = [8, 128], strides = [1, 1]} : vector<8x384xf32> to vector<8x128xf32>
    %90 = vector.extract_strided_slice %88 {offsets = [0, 128], sizes = [8, 128], strides = [1, 1]} : vector<8x384xf32> to vector<8x128xf32>
    %91 = vector.extract_strided_slice %88 {offsets = [0, 256], sizes = [8, 128], strides = [1, 1]} : vector<8x384xf32> to vector<8x128xf32>
    %92 = vector.extract_strided_slice %82 {offsets = [0, 384], sizes = [8, 128], strides = [1, 1]} : vector<8x512xf32> to vector<8x128xf32>
    %93 = math.tanh %92 : vector<8x128xf32>
    %94 = arith.mulf %90, %75 : vector<8x128xf32>
    %95 = arith.mulf %89, %93 : vector<8x128xf32>
    %96 = arith.addf %94, %95 : vector<8x128xf32>
    %97 = math.tanh %96 : vector<8x128xf32>
    %98 = arith.mulf %91, %97 : vector<8x128xf32>
    %c0_53 = arith.constant 0 : index
    %c0_54 = arith.constant 0 : index
    %99 = vector.load %arg9[%c0_53, %c0_54] : memref<8x128xf32, #tpu.memory_space<vmem>>, vector<8x128xf32>
    tpu.vector_store %arg9[%c0_53, %c0_54], %98 {strides = array<i32>} : memref<8x128xf32, #tpu.memory_space<vmem>>, vector<8x128xf32>,
    %c0_55 = arith.constant 0 : index
    %c0_56 = arith.constant 0 : index
    %100 = vector.load %arg10[%c0_55, %c0_56] : memref<8x128xf32, #tpu.memory_space<vmem>>, vector<8x128xf32>
    tpu.vector_store %arg10[%c0_55, %c0_56], %96 {strides = array<i32>} : memref<8x128xf32, #tpu.memory_space<vmem>>, vector<8x128xf32>,
    %101 = arith.index_cast %c2_i32 : i32 to index
    %c0_57 = arith.constant 0 : index
    %c0_58 = arith.constant 0 : index
    %102 = vector.load %arg6[%101, %c0_57, %c0_58] : memref<8x8x128xf32, #tpu.memory_space<vmem>>, vector<1x8x128xf32>
    %103 = vector.shape_cast %102 : vector<1x8x128xf32> to vector<8x128xf32>
    %104 = vector.shape_cast %98 : vector<8x128xf32> to vector<1x8x128xf32>
    tpu.vector_store %arg6[%101, %c0_57, %c0_58], %104 {strides = array<i32>} : memref<8x8x128xf32, #tpu.memory_space<vmem>>, vector<1x8x128xf32>,
    %c3_i32 = arith.constant 3 : i32
    %c0_59 = arith.constant 0 : index
    %c0_60 = arith.constant 0 : index
    %105 = vector.load %arg9[%c0_59, %c0_60] : memref<8x128xf32, #tpu.memory_space<vmem>>, vector<8x128xf32>
    %c0_61 = arith.constant 0 : index
    %c0_62 = arith.constant 0 : index
    %106 = vector.load %arg10[%c0_61, %c0_62] : memref<8x128xf32, #tpu.memory_space<vmem>>, vector<8x128xf32>
    %107 = arith.index_cast %c3_i32 : i32 to index
    %c0_63 = arith.constant 0 : index
    %c0_64 = arith.constant 0 : index
    %108 = vector.load %arg11[%107, %c0_63, %c0_64] : memref<8x8x512xf32, #tpu.memory_space<vmem>>, vector<1x8x512xf32>
    %109 = vector.shape_cast %108 : vector<1x8x512xf32> to vector<8x512xf32>
    %110 = arith.truncf %105 : vector<8x128xf32> to vector<8x128xbf16>
    %c0_65 = arith.constant 0 : index
    %c0_66 = arith.constant 0 : index
    %111 = vector.load %arg4[%c0_65, %c0_66] : memref<128x512xbf16, #tpu.memory_space<vmem>>, vector<128x512xbf16>
    %cst_67 = arith.constant dense<0.000000e+00> : vector<8x512xf32>
    %112 = tpu.matmul %110, %111, %cst_67 {dimension_numbers = #tpu.dot_dimension_numbers<[1], [0], [0], [1], [0, 0, 1, 1], [], []>} : vector<8x128xbf16>, vector<128x512xbf16>, vector<8x512xf32> -> vector<8x512xf32>
    %113 = arith.addf %109, %112 : vector<8x512xf32>
    %114 = vector.extract_strided_slice %113 {offsets = [0, 0], sizes = [8, 384], strides = [1, 1]} : vector<8x512xf32> to vector<8x384xf32>
    %115 = arith.negf %114 : vector<8x384xf32>
    %116 = math.exp %115 : vector<8x384xf32>
    %cst_68 = arith.constant 1.000000e+00 : f32
    %117 = vector.broadcast %cst_68 : f32 to vector<8x384xf32>
    %118 = arith.addf %117, %116 : vector<8x384xf32>
    %119 = arith.divf %117, %118 : vector<8x384xf32>
    %120 = vector.extract_strided_slice %119 {offsets = [0, 0], sizes = [8, 128], strides = [1, 1]} : vector<8x384xf32> to vector<8x128xf32>
    %121 = vector.extract_strided_slice %119 {offsets = [0, 128], sizes = [8, 128], strides = [1, 1]} : vector<8x384xf32> to vector<8x128xf32>
    %122 = vector.extract_strided_slice %119 {offsets = [0, 256], sizes = [8, 128], strides = [1, 1]} : vector<8x384xf32> to vector<8x128xf32>
    %123 = vector.extract_strided_slice %113 {offsets = [0, 384], sizes = [8, 128], strides = [1, 1]} : vector<8x512xf32> to vector<8x128xf32>
    %124 = math.tanh %123 : vector<8x128xf32>
    %125 = arith.mulf %121, %106 : vector<8x128xf32>
    %126 = arith.mulf %120, %124 : vector<8x128xf32>
    %127 = arith.addf %125, %126 : vector<8x128xf32>
    %128 = math.tanh %127 : vector<8x128xf32>
    %129 = arith.mulf %122, %128 : vector<8x128xf32>
    %c0_69 = arith.constant 0 : index
    %c0_70 = arith.constant 0 : index
    %130 = vector.load %arg9[%c0_69, %c0_70] : memref<8x128xf32, #tpu.memory_space<vmem>>, vector<8x128xf32>
    tpu.vector_store %arg9[%c0_69, %c0_70], %129 {strides = array<i32>} : memref<8x128xf32, #tpu.memory_space<vmem>>, vector<8x128xf32>,
    %c0_71 = arith.constant 0 : index
    %c0_72 = arith.constant 0 : index
    %131 = vector.load %arg10[%c0_71, %c0_72] : memref<8x128xf32, #tpu.memory_space<vmem>>, vector<8x128xf32>
    tpu.vector_store %arg10[%c0_71, %c0_72], %127 {strides = array<i32>} : memref<8x128xf32, #tpu.memory_space<vmem>>, vector<8x128xf32>,
    %132 = arith.index_cast %c3_i32 : i32 to index
    %c0_73 = arith.constant 0 : index
    %c0_74 = arith.constant 0 : index
    %133 = vector.load %arg6[%132, %c0_73, %c0_74] : memref<8x8x128xf32, #tpu.memory_space<vmem>>, vector<1x8x128xf32>
    %134 = vector.shape_cast %133 : vector<1x8x128xf32> to vector<8x128xf32>
    %135 = vector.shape_cast %129 : vector<8x128xf32> to vector<1x8x128xf32>
    tpu.vector_store %arg6[%132, %c0_73, %c0_74], %135 {strides = array<i32>} : memref<8x8x128xf32, #tpu.memory_space<vmem>>, vector<1x8x128xf32>,
    %c4_i32 = arith.constant 4 : i32
    %c0_75 = arith.constant 0 : index
    %c0_76 = arith.constant 0 : index
    %136 = vector.load %arg9[%c0_75, %c0_76] : memref<8x128xf32, #tpu.memory_space<vmem>>, vector<8x128xf32>
    %c0_77 = arith.constant 0 : index
    %c0_78 = arith.constant 0 : index
    %137 = vector.load %arg10[%c0_77, %c0_78] : memref<8x128xf32, #tpu.memory_space<vmem>>, vector<8x128xf32>
    %138 = arith.index_cast %c4_i32 : i32 to index
    %c0_79 = arith.constant 0 : index
    %c0_80 = arith.constant 0 : index
    %139 = vector.load %arg11[%138, %c0_79, %c0_80] : memref<8x8x512xf32, #tpu.memory_space<vmem>>, vector<1x8x512xf32>
    %140 = vector.shape_cast %139 : vector<1x8x512xf32> to vector<8x512xf32>
    %141 = arith.truncf %136 : vector<8x128xf32> to vector<8x128xbf16>
    %c0_81 = arith.constant 0 : index
    %c0_82 = arith.constant 0 : index
    %142 = vector.load %arg4[%c0_81, %c0_82] : memref<128x512xbf16, #tpu.memory_space<vmem>>, vector<128x512xbf16>
    %cst_83 = arith.constant dense<0.000000e+00> : vector<8x512xf32>
    %143 = tpu.matmul %141, %142, %cst_83 {dimension_numbers = #tpu.dot_dimension_numbers<[1], [0], [0], [1], [0, 0, 1, 1], [], []>} : vector<8x128xbf16>, vector<128x512xbf16>, vector<8x512xf32> -> vector<8x512xf32>
    %144 = arith.addf %140, %143 : vector<8x512xf32>
    %145 = vector.extract_strided_slice %144 {offsets = [0, 0], sizes = [8, 384], strides = [1, 1]} : vector<8x512xf32> to vector<8x384xf32>
    %146 = arith.negf %145 : vector<8x384xf32>
    %147 = math.exp %146 : vector<8x384xf32>
    %cst_84 = arith.constant 1.000000e+00 : f32
    %148 = vector.broadcast %cst_84 : f32 to vector<8x384xf32>
    %149 = arith.addf %148, %147 : vector<8x384xf32>
    %150 = arith.divf %148, %149 : vector<8x384xf32>
    %151 = vector.extract_strided_slice %150 {offsets = [0, 0], sizes = [8, 128], strides = [1, 1]} : vector<8x384xf32> to vector<8x128xf32>
    %152 = vector.extract_strided_slice %150 {offsets = [0, 128], sizes = [8, 128], strides = [1, 1]} : vector<8x384xf32> to vector<8x128xf32>
    %153 = vector.extract_strided_slice %150 {offsets = [0, 256], sizes = [8, 128], strides = [1, 1]} : vector<8x384xf32> to vector<8x128xf32>
    %154 = vector.extract_strided_slice %144 {offsets = [0, 384], sizes = [8, 128], strides = [1, 1]} : vector<8x512xf32> to vector<8x128xf32>
    %155 = math.tanh %154 : vector<8x128xf32>
    %156 = arith.mulf %152, %137 : vector<8x128xf32>
    %157 = arith.mulf %151, %155 : vector<8x128xf32>
    %158 = arith.addf %156, %157 : vector<8x128xf32>
    %159 = math.tanh %158 : vector<8x128xf32>
    %160 = arith.mulf %153, %159 : vector<8x128xf32>
    %c0_85 = arith.constant 0 : index
    %c0_86 = arith.constant 0 : index
    %161 = vector.load %arg9[%c0_85, %c0_86] : memref<8x128xf32, #tpu.memory_space<vmem>>, vector<8x128xf32>
    tpu.vector_store %arg9[%c0_85, %c0_86], %160 {strides = array<i32>} : memref<8x128xf32, #tpu.memory_space<vmem>>, vector<8x128xf32>,
    %c0_87 = arith.constant 0 : index
    %c0_88 = arith.constant 0 : index
    %162 = vector.load %arg10[%c0_87, %c0_88] : memref<8x128xf32, #tpu.memory_space<vmem>>, vector<8x128xf32>
    tpu.vector_store %arg10[%c0_87, %c0_88], %158 {strides = array<i32>} : memref<8x128xf32, #tpu.memory_space<vmem>>, vector<8x128xf32>,
    %163 = arith.index_cast %c4_i32 : i32 to index
    %c0_89 = arith.constant 0 : index
    %c0_90 = arith.constant 0 : index
    %164 = vector.load %arg6[%163, %c0_89, %c0_90] : memref<8x8x128xf32, #tpu.memory_space<vmem>>, vector<1x8x128xf32>
    %165 = vector.shape_cast %164 : vector<1x8x128xf32> to vector<8x128xf32>
    %166 = vector.shape_cast %160 : vector<8x128xf32> to vector<1x8x128xf32>
    tpu.vector_store %arg6[%163, %c0_89, %c0_90], %166 {strides = array<i32>} : memref<8x8x128xf32, #tpu.memory_space<vmem>>, vector<1x8x128xf32>,
    %c5_i32 = arith.constant 5 : i32
    %c0_91 = arith.constant 0 : index
    %c0_92 = arith.constant 0 : index
    %167 = vector.load %arg9[%c0_91, %c0_92] : memref<8x128xf32, #tpu.memory_space<vmem>>, vector<8x128xf32>
    %c0_93 = arith.constant 0 : index
    %c0_94 = arith.constant 0 : index
    %168 = vector.load %arg10[%c0_93, %c0_94] : memref<8x128xf32, #tpu.memory_space<vmem>>, vector<8x128xf32>
    %169 = arith.index_cast %c5_i32 : i32 to index
    %c0_95 = arith.constant 0 : index
    %c0_96 = arith.constant 0 : index
    %170 = vector.load %arg11[%169, %c0_95, %c0_96] : memref<8x8x512xf32, #tpu.memory_space<vmem>>, vector<1x8x512xf32>
    %171 = vector.shape_cast %170 : vector<1x8x512xf32> to vector<8x512xf32>
    %172 = arith.truncf %167 : vector<8x128xf32> to vector<8x128xbf16>
    %c0_97 = arith.constant 0 : index
    %c0_98 = arith.constant 0 : index
    %173 = vector.load %arg4[%c0_97, %c0_98] : memref<128x512xbf16, #tpu.memory_space<vmem>>, vector<128x512xbf16>
    %cst_99 = arith.constant dense<0.000000e+00> : vector<8x512xf32>
    %174 = tpu.matmul %172, %173, %cst_99 {dimension_numbers = #tpu.dot_dimension_numbers<[1], [0], [0], [1], [0, 0, 1, 1], [], []>} : vector<8x128xbf16>, vector<128x512xbf16>, vector<8x512xf32> -> vector<8x512xf32>
    %175 = arith.addf %171, %174 : vector<8x512xf32>
    %176 = vector.extract_strided_slice %175 {offsets = [0, 0], sizes = [8, 384], strides = [1, 1]} : vector<8x512xf32> to vector<8x384xf32>
    %177 = arith.negf %176 : vector<8x384xf32>
    %178 = math.exp %177 : vector<8x384xf32>
    %cst_100 = arith.constant 1.000000e+00 : f32
    %179 = vector.broadcast %cst_100 : f32 to vector<8x384xf32>
    %180 = arith.addf %179, %178 : vector<8x384xf32>
    %181 = arith.divf %179, %180 : vector<8x384xf32>
    %182 = vector.extract_strided_slice %181 {offsets = [0, 0], sizes = [8, 128], strides = [1, 1]} : vector<8x384xf32> to vector<8x128xf32>
    %183 = vector.extract_strided_slice %181 {offsets = [0, 128], sizes = [8, 128], strides = [1, 1]} : vector<8x384xf32> to vector<8x128xf32>
    %184 = vector.extract_strided_slice %181 {offsets = [0, 256], sizes = [8, 128], strides = [1, 1]} : vector<8x384xf32> to vector<8x128xf32>
    %185 = vector.extract_strided_slice %175 {offsets = [0, 384], sizes = [8, 128], strides = [1, 1]} : vector<8x512xf32> to vector<8x128xf32>
    %186 = math.tanh %185 : vector<8x128xf32>
    %187 = arith.mulf %183, %168 : vector<8x128xf32>
    %188 = arith.mulf %182, %186 : vector<8x128xf32>
    %189 = arith.addf %187, %188 : vector<8x128xf32>
    %190 = math.tanh %189 : vector<8x128xf32>
    %191 = arith.mulf %184, %190 : vector<8x128xf32>
    %c0_101 = arith.constant 0 : index
    %c0_102 = arith.constant 0 : index
    %192 = vector.load %arg9[%c0_101, %c0_102] : memref<8x128xf32, #tpu.memory_space<vmem>>, vector<8x128xf32>
    tpu.vector_store %arg9[%c0_101, %c0_102], %191 {strides = array<i32>} : memref<8x128xf32, #tpu.memory_space<vmem>>, vector<8x128xf32>,
    %c0_103 = arith.constant 0 : index
    %c0_104 = arith.constant 0 : index
    %193 = vector.load %arg10[%c0_103, %c0_104] : memref<8x128xf32, #tpu.memory_space<vmem>>, vector<8x128xf32>
    tpu.vector_store %arg10[%c0_103, %c0_104], %189 {strides = array<i32>} : memref<8x128xf32, #tpu.memory_space<vmem>>, vector<8x128xf32>,
    %194 = arith.index_cast %c5_i32 : i32 to index
    %c0_105 = arith.constant 0 : index
    %c0_106 = arith.constant 0 : index
    %195 = vector.load %arg6[%194, %c0_105, %c0_106] : memref<8x8x128xf32, #tpu.memory_space<vmem>>, vector<1x8x128xf32>
    %196 = vector.shape_cast %195 : vector<1x8x128xf32> to vector<8x128xf32>
    %197 = vector.shape_cast %191 : vector<8x128xf32> to vector<1x8x128xf32>
    tpu.vector_store %arg6[%194, %c0_105, %c0_106], %197 {strides = array<i32>} : memref<8x8x128xf32, #tpu.memory_space<vmem>>, vector<1x8x128xf32>,
    %c6_i32 = arith.constant 6 : i32
    %c0_107 = arith.constant 0 : index
    %c0_108 = arith.constant 0 : index
    %198 = vector.load %arg9[%c0_107, %c0_108] : memref<8x128xf32, #tpu.memory_space<vmem>>, vector<8x128xf32>
    %c0_109 = arith.constant 0 : index
    %c0_110 = arith.constant 0 : index
    %199 = vector.load %arg10[%c0_109, %c0_110] : memref<8x128xf32, #tpu.memory_space<vmem>>, vector<8x128xf32>
    %200 = arith.index_cast %c6_i32 : i32 to index
    %c0_111 = arith.constant 0 : index
    %c0_112 = arith.constant 0 : index
    %201 = vector.load %arg11[%200, %c0_111, %c0_112] : memref<8x8x512xf32, #tpu.memory_space<vmem>>, vector<1x8x512xf32>
    %202 = vector.shape_cast %201 : vector<1x8x512xf32> to vector<8x512xf32>
    %203 = arith.truncf %198 : vector<8x128xf32> to vector<8x128xbf16>
    %c0_113 = arith.constant 0 : index
    %c0_114 = arith.constant 0 : index
    %204 = vector.load %arg4[%c0_113, %c0_114] : memref<128x512xbf16, #tpu.memory_space<vmem>>, vector<128x512xbf16>
    %cst_115 = arith.constant dense<0.000000e+00> : vector<8x512xf32>
    %205 = tpu.matmul %203, %204, %cst_115 {dimension_numbers = #tpu.dot_dimension_numbers<[1], [0], [0], [1], [0, 0, 1, 1], [], []>} : vector<8x128xbf16>, vector<128x512xbf16>, vector<8x512xf32> -> vector<8x512xf32>
    %206 = arith.addf %202, %205 : vector<8x512xf32>
    %207 = vector.extract_strided_slice %206 {offsets = [0, 0], sizes = [8, 384], strides = [1, 1]} : vector<8x512xf32> to vector<8x384xf32>
    %208 = arith.negf %207 : vector<8x384xf32>
    %209 = math.exp %208 : vector<8x384xf32>
    %cst_116 = arith.constant 1.000000e+00 : f32
    %210 = vector.broadcast %cst_116 : f32 to vector<8x384xf32>
    %211 = arith.addf %210, %209 : vector<8x384xf32>
    %212 = arith.divf %210, %211 : vector<8x384xf32>
    %213 = vector.extract_strided_slice %212 {offsets = [0, 0], sizes = [8, 128], strides = [1, 1]} : vector<8x384xf32> to vector<8x128xf32>
    %214 = vector.extract_strided_slice %212 {offsets = [0, 128], sizes = [8, 128], strides = [1, 1]} : vector<8x384xf32> to vector<8x128xf32>
    %215 = vector.extract_strided_slice %212 {offsets = [0, 256], sizes = [8, 128], strides = [1, 1]} : vector<8x384xf32> to vector<8x128xf32>
    %216 = vector.extract_strided_slice %206 {offsets = [0, 384], sizes = [8, 128], strides = [1, 1]} : vector<8x512xf32> to vector<8x128xf32>
    %217 = math.tanh %216 : vector<8x128xf32>
    %218 = arith.mulf %214, %199 : vector<8x128xf32>
    %219 = arith.mulf %213, %217 : vector<8x128xf32>
    %220 = arith.addf %218, %219 : vector<8x128xf32>
    %221 = math.tanh %220 : vector<8x128xf32>
    %222 = arith.mulf %215, %221 : vector<8x128xf32>
    %c0_117 = arith.constant 0 : index
    %c0_118 = arith.constant 0 : index
    %223 = vector.load %arg9[%c0_117, %c0_118] : memref<8x128xf32, #tpu.memory_space<vmem>>, vector<8x128xf32>
    tpu.vector_store %arg9[%c0_117, %c0_118], %222 {strides = array<i32>} : memref<8x128xf32, #tpu.memory_space<vmem>>, vector<8x128xf32>,
    %c0_119 = arith.constant 0 : index
    %c0_120 = arith.constant 0 : index
    %224 = vector.load %arg10[%c0_119, %c0_120] : memref<8x128xf32, #tpu.memory_space<vmem>>, vector<8x128xf32>
    tpu.vector_store %arg10[%c0_119, %c0_120], %220 {strides = array<i32>} : memref<8x128xf32, #tpu.memory_space<vmem>>, vector<8x128xf32>,
    %225 = arith.index_cast %c6_i32 : i32 to index
    %c0_121 = arith.constant 0 : index
    %c0_122 = arith.constant 0 : index
    %226 = vector.load %arg6[%225, %c0_121, %c0_122] : memref<8x8x128xf32, #tpu.memory_space<vmem>>, vector<1x8x128xf32>
    %227 = vector.shape_cast %226 : vector<1x8x128xf32> to vector<8x128xf32>
    %228 = vector.shape_cast %222 : vector<8x128xf32> to vector<1x8x128xf32>
    tpu.vector_store %arg6[%225, %c0_121, %c0_122], %228 {strides = array<i32>} : memref<8x8x128xf32, #tpu.memory_space<vmem>>, vector<1x8x128xf32>,
    %c7_i32 = arith.constant 7 : i32
    %c0_123 = arith.constant 0 : index
    %c0_124 = arith.constant 0 : index
    %229 = vector.load %arg9[%c0_123, %c0_124] : memref<8x128xf32, #tpu.memory_space<vmem>>, vector<8x128xf32>
    %c0_125 = arith.constant 0 : index
    %c0_126 = arith.constant 0 : index
    %230 = vector.load %arg10[%c0_125, %c0_126] : memref<8x128xf32, #tpu.memory_space<vmem>>, vector<8x128xf32>
    %231 = arith.index_cast %c7_i32 : i32 to index
    %c0_127 = arith.constant 0 : index
    %c0_128 = arith.constant 0 : index
    %232 = vector.load %arg11[%231, %c0_127, %c0_128] : memref<8x8x512xf32, #tpu.memory_space<vmem>>, vector<1x8x512xf32>
    %233 = vector.shape_cast %232 : vector<1x8x512xf32> to vector<8x512xf32>
    %234 = arith.truncf %229 : vector<8x128xf32> to vector<8x128xbf16>
    %c0_129 = arith.constant 0 : index
    %c0_130 = arith.constant 0 : index
    %235 = vector.load %arg4[%c0_129, %c0_130] : memref<128x512xbf16, #tpu.memory_space<vmem>>, vector<128x512xbf16>
    %cst_131 = arith.constant dense<0.000000e+00> : vector<8x512xf32>
    %236 = tpu.matmul %234, %235, %cst_131 {dimension_numbers = #tpu.dot_dimension_numbers<[1], [0], [0], [1], [0, 0, 1, 1], [], []>} : vector<8x128xbf16>, vector<128x512xbf16>, vector<8x512xf32> -> vector<8x512xf32>
    %237 = arith.addf %233, %236 : vector<8x512xf32>
    %238 = vector.extract_strided_slice %237 {offsets = [0, 0], sizes = [8, 384], strides = [1, 1]} : vector<8x512xf32> to vector<8x384xf32>
    %239 = arith.negf %238 : vector<8x384xf32>
    %240 = math.exp %239 : vector<8x384xf32>
    %cst_132 = arith.constant 1.000000e+00 : f32
    %241 = vector.broadcast %cst_132 : f32 to vector<8x384xf32>
    %242 = arith.addf %241, %240 : vector<8x384xf32>
    %243 = arith.divf %241, %242 : vector<8x384xf32>
    %244 = vector.extract_strided_slice %243 {offsets = [0, 0], sizes = [8, 128], strides = [1, 1]} : vector<8x384xf32> to vector<8x128xf32>
    %245 = vector.extract_strided_slice %243 {offsets = [0, 128], sizes = [8, 128], strides = [1, 1]} : vector<8x384xf32> to vector<8x128xf32>
    %246 = vector.extract_strided_slice %243 {offsets = [0, 256], sizes = [8, 128], strides = [1, 1]} : vector<8x384xf32> to vector<8x128xf32>
    %247 = vector.extract_strided_slice %237 {offsets = [0, 384], sizes = [8, 128], strides = [1, 1]} : vector<8x512xf32> to vector<8x128xf32>
    %248 = math.tanh %247 : vector<8x128xf32>
    %249 = arith.mulf %245, %230 : vector<8x128xf32>
    %250 = arith.mulf %244, %248 : vector<8x128xf32>
    %251 = arith.addf %249, %250 : vector<8x128xf32>
    %252 = math.tanh %251 : vector<8x128xf32>
    %253 = arith.mulf %246, %252 : vector<8x128xf32>
    %c0_133 = arith.constant 0 : index
    %c0_134 = arith.constant 0 : index
    %254 = vector.load %arg9[%c0_133, %c0_134] : memref<8x128xf32, #tpu.memory_space<vmem>>, vector<8x128xf32>
    tpu.vector_store %arg9[%c0_133, %c0_134], %253 {strides = array<i32>} : memref<8x128xf32, #tpu.memory_space<vmem>>, vector<8x128xf32>,
    %c0_135 = arith.constant 0 : index
    %c0_136 = arith.constant 0 : index
    %255 = vector.load %arg10[%c0_135, %c0_136] : memref<8x128xf32, #tpu.memory_space<vmem>>, vector<8x128xf32>
    tpu.vector_store %arg10[%c0_135, %c0_136], %251 {strides = array<i32>} : memref<8x128xf32, #tpu.memory_space<vmem>>, vector<8x128xf32>,
    %256 = arith.index_cast %c7_i32 : i32 to index
    %c0_137 = arith.constant 0 : index
    %c0_138 = arith.constant 0 : index
    %257 = vector.load %arg6[%256, %c0_137, %c0_138] : memref<8x8x128xf32, #tpu.memory_space<vmem>>, vector<1x8x128xf32>
    %258 = vector.shape_cast %257 : vector<1x8x128xf32> to vector<8x128xf32>
    %259 = vector.shape_cast %253 : vector<8x128xf32> to vector<1x8x128xf32>
    tpu.vector_store %arg6[%256, %c0_137, %c0_138], %259 {strides = array<i32>} : memref<8x8x128xf32, #tpu.memory_space<vmem>>, vector<1x8x128xf32>,
    %c8_i32 = arith.constant 8 : i32
    %c0_i32_139 = arith.constant 0 : i32
    %260 = arith.cmpi eq, %arg1, %c0_i32_139 : i32
    %261 = arith.extui %260 : i1 to i32
    %c0_i32_140 = arith.constant 0 : i32
    %262 = arith.cmpi ne, %261, %c0_i32_140 : i32
    scf.if %262 {
      %c0_141 = arith.constant 0 : index
      %c0_142 = arith.constant 0 : index
      %263 = vector.load %arg9[%c0_141, %c0_142] : memref<8x128xf32, #tpu.memory_space<vmem>>, vector<8x128xf32>
      %c0_143 = arith.constant 0 : index
      %c0_144 = arith.constant 0 : index
      %c0_145 = arith.constant 0 : index
      %264 = vector.load %arg7[%c0_143, %c0_144, %c0_145] : memref<1x8x128xf32, #tpu.memory_space<vmem>>, vector<1x8x128xf32>
      %265 = vector.shape_cast %264 : vector<1x8x128xf32> to vector<8x128xf32>
      %266 = vector.shape_cast %263 : vector<8x128xf32> to vector<1x8x128xf32>
      tpu.vector_store %arg7[%c0_143, %c0_144, %c0_145], %266 {strides = array<i32>} : memref<1x8x128xf32, #tpu.memory_space<vmem>>, vector<1x8x128xf32>,
      %c0_146 = arith.constant 0 : index
      %c0_147 = arith.constant 0 : index
      %267 = vector.load %arg10[%c0_146, %c0_147] : memref<8x128xf32, #tpu.memory_space<vmem>>, vector<8x128xf32>
      %c0_148 = arith.constant 0 : index
      %c0_149 = arith.constant 0 : index
      %c0_150 = arith.constant 0 : index
      %268 = vector.load %arg8[%c0_148, %c0_149, %c0_150] : memref<1x8x128xf32, #tpu.memory_space<vmem>>, vector<1x8x128xf32>
      %269 = vector.shape_cast %268 : vector<1x8x128xf32> to vector<8x128xf32>
      %270 = vector.shape_cast %267 : vector<8x128xf32> to vector<1x8x128xf32>
      tpu.vector_store %arg8[%c0_148, %c0_149, %c0_150], %270 {strides = array<i32>} : memref<1x8x128xf32, #tpu.memory_space<vmem>>, vector<1x8x128xf32>,
    } else {
    }
    return
  }
  func.func @transform_0(%arg0: i32, %arg1: i32) -> (i32, i32, i32) {
    %c0_i32 = arith.constant 0 : i32
    %c0_i32_0 = arith.constant 0 : i32
    return %arg1, %arg0, %c0_i32 : i32, i32, i32
  }
  func.func @transform_1(%arg0: i32, %arg1: i32) -> (i32, i32) {
    %c0_i32 = arith.constant 0 : i32
    %c0_i32_0 = arith.constant 0 : i32
    %c0_i32_1 = arith.constant 0 : i32
    return %c0_i32, %c0_i32_0 : i32, i32
  }
  func.func @transform_2(%arg0: i32, %arg1: i32) -> (i32, i32) {
    %c0_i32 = arith.constant 0 : i32
    %c0_i32_0 = arith.constant 0 : i32
    %c0_i32_1 = arith.constant 0 : i32
    return %c0_i32, %c0_i32_0 : i32, i32
  }
  func.func @transform_3(%arg0: i32, %arg1: i32) -> (i32, i32) {
    %c0_i32 = arith.constant 0 : i32
    %c0_i32_0 = arith.constant 0 : i32
    %c0_i32_1 = arith.constant 0 : i32
    return %c0_i32, %c0_i32_0 : i32, i32
  }
  func.func @transform_4(%arg0: i32, %arg1: i32) -> (i32, i32, i32) {
    %c0_i32 = arith.constant 0 : i32
    %c0_i32_0 = arith.constant 0 : i32
    return %arg1, %arg0, %c0_i32 : i32, i32, i32
  }
  func.func @transform_5(%arg0: i32, %arg1: i32) -> (i32, i32, i32) {
    %c0_i32 = arith.constant 0 : i32
    %c0_i32_0 = arith.constant 0 : i32
    %c0_i32_1 = arith.constant 0 : i32
    return %c0_i32, %arg0, %c0_i32_0 : i32, i32, i32
  }
  func.func @transform_6(%arg0: i32, %arg1: i32) -> (i32, i32, i32) {
    %c0_i32 = arith.constant 0 : i32
    %c0_i32_0 = arith.constant 0 : i32
    %c0_i32_1 = arith.constant 0 : i32
    return %c0_i32, %arg0, %c0_i32_0 : i32, i32, i32
  }
}

</mosaic_0001>

<bundles_post_ra>
// kernel: tpu_custom_call.1
= control target key start
LH: loop header
LB: loop body
LE: loop exit
PB: predicated region body
PF: predicated region fallthrough
CT: control target
= control target key end

     0   :  { %12 = vsyncpa [#allocation6], 0  ;;  %s4488_s0 = inlined_call_operand.hbm [shape: bf16[8,8,128], index: 0, kind: input, shape index: {}]   ;;  %s4489_s1 = inlined_call_operand.hbm [shape: bf16[128,512], index: 1, kind: input, shape index: {}]   ;;  %s4490_s2 = inlined_call_operand.hbm [shape: bf16[128,512], index: 2, kind: input, shape index: {}]   ;;  %s4491_s3 = inlined_call_operand.vmem [shape: f32[1,512], index: 3, kind: input, shape index: {}]   ;;  %s4492_s4 = inlined_call_operand.hbm [shape: f32[8,8,128], index: 4, kind: output, shape index: {0}]   ;;  %s4493_s5 = inlined_call_operand.hbm [shape: f32[1,8,128], index: 5, kind: output, shape index: {1}]   ;;  %s4494_s6 = inlined_call_operand.hbm [shape: f32[1,8,128], index: 6, kind: output, shape index: {2}]  }
   0x1   :  { %13 = vsyncpa [#allocation9], 0 }
   0x2   :  { %14 = vsyncpa [#allocation7], 0 }
   0x3   :  { %15 = vsyncpa [#allocation13], 0  ;;  %s3802_s21 = smov [#allocation8]   ;;  %s3662_s25 = scalar_lea.hbm %s4489_s1, 4096 }
   0x4   :  { %s33_s22 = sshll.u32 %s3802_s21, 4  ;;  %p3663_p0 = scmp.ne.s32.totalorder %s4489_s1, %s3662_s25  ;;  %s34_s22 = int_to_ptr.vmem [resolvable:$true] %s33_s22 }
   0x5   :  { %p3666_p1 = scmp.lt.u32.totalorder %s3662_s25, %s4489_s1 }
   0x7   :  { %p3668_p2 = pnand %p3666_p1, %p3663_p0 }
   0x9   :  { %3671 = shalt.err (!%p3668_p2)
}
   0xa   :  { %s3672_s30 = scalar_lea.vmem %s34_s22, 4096  ;;  %p3677_p4 = scmp.lt.s32.totalorder %s34_s22, %s34_s22 }
   0xb   :  { %p3673_p3 = scmp.ne.s32.totalorder %s34_s22, %s3672_s30  ;;  %p3678_p5 = scmp.lt.s32.totalorder %s3672_s30, %s3672_s30 }
   0xd   :  { %p3679_p6 = por %p3678_p5, %p3677_p4 }
   0xf   :  { %p3680_p7 = pnand %p3679_p6, %p3673_p3 }
  0x11   :  { %3683 = shalt.err (!%p3680_p7)
}
  0x12   :  { %s3803_s7 = smov 256   ;;  %s3804_s8 = smov 16  }
  0x13   :  { %39 = dma.hbm_to_vmem [thread:$0]  %s4489_s1, 4096, %s34_s22, [#allocation9], %s3803_s7, %s3803_s7, %s3804_s8  }
  0x14   :  { %s3805_s11 = smov [#allocation5]   ;;  %s3684_s15 = scalar_lea.hbm %s4488_s0, 512 }
  0x15   :  { %s21_s12 = sshll.u32 %s3805_s11, 4  ;;  %p3685_p8 = scmp.ne.s32.totalorder %s4488_s0, %s3684_s15  ;;  %s22_s12 = int_to_ptr.vmem [resolvable:$true] %s21_s12 }
  0x16   :  { %p3688_p9 = scmp.lt.u32.totalorder %s3684_s15, %s4488_s0 }
  0x18   :  { %p3690_p10 = pnand %p3688_p9, %p3685_p8 }
  0x1a   :  { %3693 = shalt.err (!%p3690_p10)
}
  0x1b   :  { %s3694_s20 = scalar_lea.vmem %s22_s12, 512  ;;  %p3699_p12 = scmp.lt.s32.totalorder %s22_s12, %s22_s12 }
  0x1c   :  { %p3695_p11 = scmp.ne.s32.totalorder %s22_s12, %s3694_s20  ;;  %p3700_p13 = scmp.lt.s32.totalorder %s3694_s20, %s3694_s20 }
  0x1e   :  { %p3701_p0 = por %p3700_p13, %p3699_p12 }
  0x20   :  { %p3702_p1 = pnand %p3701_p0, %p3695_p11 }
  0x22   :  { %3705 = shalt.err (!%p3702_p1)
}
  0x23   :  { %s3806_s1 = smov 64   ;;  %s3807_s21 = smov 4  }
  0x24   :  { %27 = dma.hbm_to_vmem [thread:$0]  %s4488_s0, 512, %s22_s12, [#allocation6], %s3806_s1, %s3806_s1, %s3807_s21  }
  0x25   :  { %s3808_s24 = smov [#allocation10]   ;;  %s3706_s28 = scalar_lea.hbm %s4490_s2, 4096 }
  0x26   :  { %s45_s25 = sshll.u32 %s3808_s24, 4  ;;  %p3707_p2 = scmp.ne.s32.totalorder %s4490_s2, %s3706_s28  ;;  %s46_s25 = int_to_ptr.vmem [resolvable:$true] %s45_s25 }
  0x27   :  { %p3710_p3 = scmp.lt.u32.totalorder %s3706_s28, %s4490_s2 }
  0x29   :  { %p3712_p4 = pnand %p3710_p3, %p3707_p2 }
  0x2b   :  { %3715 = shalt.err (!%p3712_p4)
}
  0x2c   :  { %s3716_s11 = scalar_lea.vmem %s46_s25, 4096  ;;  %p3721_p6 = scmp.lt.s32.totalorder %s46_s25, %s46_s25 }
  0x2d   :  { %p3717_p5 = scmp.ne.s32.totalorder %s46_s25, %s3716_s11  ;;  %p3722_p7 = scmp.lt.s32.totalorder %s3716_s11, %s3716_s11 }
  0x2f   :  { %p3723_p8 = por %p3722_p7, %p3721_p6 }
  0x31   :  { %p3724_p9 = pnand %p3723_p8, %p3717_p5 }
  0x33   :  { %3727 = shalt.err (!%p3724_p9)
}
  0x34   :  { %51 = dma.hbm_to_vmem [thread:$0]  %s4490_s2, 4096, %s46_s25, [#allocation9], %s3803_s7, %s3803_s7, %s3804_s8  }
  0x35   :  { %3794 = dma.done.wait [#allocation6], 512  }
  0x36   :  { %3795 = vsyncadd [#allocation6], 4294966784 }
  0x37   :  { %3796 = dma.done.wait [#allocation9], 8192  }
  0x38   :  { %3797 = vsyncadd [#allocation9], 4294959104  ;;  %v4495_v0 = vmov 0   ;;  %v3386_v1 = vld [vmem:[#allocation8 + $0x4] ss:$16 sps:$4 sm:$0xff]   ;;  %v3447_v44 = vld [vmem:[#allocation5 + $0x8] sm:$0xff]  }
  0x39   :  { %348 = vmatprep.mubr.bf16.mxu0 %v4495_v0  ;;  %421 = vmatprep.mubr.bf16.mxu1 %v4495_v0  ;;  %v3388_v2 = vld [vmem:[#allocation8 + $0xc] ss:$16 sps:$4 sm:$0xff]   ;;  %v3390_v3 = vld [vmem:[#allocation8] ss:$16 sps:$4 sm:$0xff]   ;;  %v3391_v4 = vld [vmem:[#allocation8 + $0x8] ss:$16 sps:$4 sm:$0xff]  }
  0x3a   :  { %316 = vmatprep.subr.bf16.mxu0 %v3386_v1  ;;  %389 = vmatprep.subr.bf16.mxu1 %v3388_v2  ;;  %v3392_v5 = vld [vmem:[#allocation8 + $0x24] ss:$16 sps:$4 sm:$0xff]   ;;  %v3394_v6 = vld [vmem:[#allocation8 + $0x2c] ss:$16 sps:$4 sm:$0xff]   ;;  %v3396_v7 = vld [vmem:[#allocation8 + $0x20] ss:$16 sps:$4 sm:$0xff]  }
  0x3b   :  { %317 = vmatpush1.bf16.msra.mxu0 %v3390_v3  ;;  %390 = vmatpush1.bf16.msra.mxu1 %v3391_v4  ;;  %v3397_v8 = vld [vmem:[#allocation8 + $0x28] ss:$16 sps:$4 sm:$0xff]   ;;  %v3398_v9 = vld [vmem:[#allocation8 + $0x44] ss:$16 sps:$4 sm:$0xff]   ;;  %v3400_v10 = vld [vmem:[#allocation8 + $0x4c] ss:$16 sps:$4 sm:$0xff]  }
  0x3c   :  { %318 = vmatprep.subr.bf16.mxu0 %v3392_v5  ;;  %391 = vmatprep.subr.bf16.mxu1 %v3394_v6  ;;  %v3402_v11 = vld [vmem:[#allocation8 + $0x40] ss:$16 sps:$4 sm:$0xff]   ;;  %v3403_v12 = vld [vmem:[#allocation8 + $0x48] ss:$16 sps:$4 sm:$0xff]   ;;  %v3404_v13 = vld [vmem:[#allocation8 + $0x64] ss:$16 sps:$4 sm:$0xff]  }
  0x3d   :  { %v3406_v14 = vld [vmem:[#allocation8 + $0x6c] ss:$16 sps:$4 sm:$0xff]   ;;  %v3408_v15 = vld [vmem:[#allocation8 + $0x60] ss:$16 sps:$4 sm:$0xff]   ;;  %v3409_v16 = vld [vmem:[#allocation8 + $0x68] ss:$16 sps:$4 sm:$0xff]  }
  0x3e   :  { %v3410_v17 = vld [vmem:[#allocation8 + $0x84] ss:$16 sps:$4 sm:$0xff]   ;;  %v3412_v18 = vld [vmem:[#allocation8 + $0x8c] ss:$16 sps:$4 sm:$0xff]   ;;  %v3414_v19 = vld [vmem:[#allocation8 + $0x80] ss:$16 sps:$4 sm:$0xff]  }
  0x3f   :  { %319 = vmatpush1.bf16.msra.mxu0 %v3396_v7  ;;  %392 = vmatpush1.bf16.msra.mxu1 %v3397_v8  ;;  %v3415_v20 = vld [vmem:[#allocation8 + $0x88] ss:$16 sps:$4 sm:$0xff]   ;;  %v3416_v21 = vld [vmem:[#allocation8 + $0xa4] ss:$16 sps:$4 sm:$0xff]   ;;  %v3418_v22 = vld [vmem:[#allocation8 + $0xac] ss:$16 sps:$4 sm:$0xff]   ;;  %v112_v7 = vlaneseq }
  0x40   :  { %320 = vmatprep.subr.bf16.mxu0 %v3398_v9  ;;  %393 = vmatprep.subr.bf16.mxu1 %v3400_v10  ;;  %v3420_v23 = vld [vmem:[#allocation8 + $0xa0] ss:$16 sps:$4 sm:$0xff]   ;;  %v3421_v24 = vld [vmem:[#allocation8 + $0xa8] ss:$16 sps:$4 sm:$0xff]   ;;  %v3422_v25 = vld [vmem:[#allocation8 + $0xc4] ss:$16 sps:$4 sm:$0xff]  }
  0x41   :  { %v3424_v26 = vld [vmem:[#allocation8 + $0xcc] ss:$16 sps:$4 sm:$0xff]   ;;  %v3426_v27 = vld [vmem:[#allocation8 + $0xc0] ss:$16 sps:$4 sm:$0xff]   ;;  %v3427_v28 = vld [vmem:[#allocation8 + $0xc8] ss:$16 sps:$4 sm:$0xff]  }
  0x42   :  { %v3428_v29 = vld [vmem:[#allocation8 + $0xe4] ss:$16 sps:$4 sm:$0xff]   ;;  %v3430_v30 = vld [vmem:[#allocation8 + $0xec] ss:$16 sps:$4 sm:$0xff]   ;;  %v3432_v31 = vld [vmem:[#allocation8 + $0xe0] ss:$16 sps:$4 sm:$0xff]  }
  0x43   :  { %321 = vmatpush1.bf16.msra.mxu0 %v3402_v11  ;;  %394 = vmatpush1.bf16.msra.mxu1 %v3403_v12  ;;  %v3433_v32 = vld [vmem:[#allocation8 + $0xe8] ss:$16 sps:$4 sm:$0xff]   ;;  %v3895_v33 = vld [vmem:[#allocation10 + $0x4] ss:$16 sps:$4 sm:$0xff]   ;;  %v3897_v34 = vld [vmem:[#allocation10 + $0xc] ss:$16 sps:$4 sm:$0xff]  }
  0x44   :  { %322 = vmatprep.subr.bf16.mxu0 %v3404_v13  ;;  %395 = vmatprep.subr.bf16.mxu1 %v3406_v14  ;;  %v3434_v35 = vld [vmem:[#allocation5] sm:$0xff]   ;;  %v3901_v37 = vld [vmem:[#allocation10 + $0x8] ss:$16 sps:$4 sm:$0xff]   ;;  %v3907_v39 = vld [vmem:[#allocation10 + $0x2c] ss:$16 sps:$4 sm:$0xff]   ;;  %v3810_v6 = vmov 0.0|0.0  }
  0x45   :  { %v3899_v36 = vld [vmem:[#allocation10] ss:$16 sps:$4 sm:$0xff]   ;;  %v3905_v38 = vld [vmem:[#allocation10 + $0x24] ss:$16 sps:$4 sm:$0xff]   ;;  %v3913_v41 = vld [vmem:[#allocation10 + $0x28] ss:$16 sps:$4 sm:$0xff]  }
  0x46   :  { %v3909_v40 = vld [vmem:[#allocation10 + $0x20] ss:$16 sps:$4 sm:$0xff]   ;;  %v3917_v42 = vld [vmem:[#allocation10 + $0x44] ss:$16 sps:$4 sm:$0xff]   ;;  %v3919_v43 = vld [vmem:[#allocation10 + $0x4c] ss:$16 sps:$4 sm:$0xff]  }
  0x47   :  { %323 = vmatpush1.bf16.msra.mxu0 %v3408_v15  ;;  %396 = vmatpush1.bf16.msra.mxu1 %v3409_v16  ;;  %v3923_v45 = vld [vmem:[#allocation10 + $0x40] ss:$16 sps:$4 sm:$0xff]   ;;  %v3925_v46 = vld [vmem:[#allocation10 + $0x48] ss:$16 sps:$4 sm:$0xff]   ;;  %v3929_v47 = vld [vmem:[#allocation10 + $0x64] ss:$16 sps:$4 sm:$0xff]  }
  0x48   :  { %324 = vmatprep.subr.bf16.mxu0 %v3410_v17  ;;  %397 = vmatprep.subr.bf16.mxu1 %v3412_v18  ;;  %v3933_v48 = vld [vmem:[#allocation10 + $0x6c] ss:$16 sps:$4 sm:$0xff]   ;;  %v3935_v49 = vld [vmem:[#allocation10 + $0x60] ss:$16 sps:$4 sm:$0xff]   ;;  %v3937_v50 = vld [vmem:[#allocation10 + $0x68] ss:$16 sps:$4 sm:$0xff]  }
  0x49   :  { %v3941_v51 = vld [vmem:[#allocation10 + $0x84] ss:$16 sps:$4 sm:$0xff]   ;;  %v3945_v52 = vld [vmem:[#allocation10 + $0x8c] ss:$16 sps:$4 sm:$0xff]   ;;  %v3949_v54 = vld [vmem:[#allocation10 + $0x80] ss:$16 sps:$4 sm:$0xff]  }
  0x4a   :  { %v3460_v53 = vld [vmem:[#allocation5 + $0x10] sm:$0xff]   ;;  %v3951_v55 = vld [vmem:[#allocation10 + $0x88] ss:$16 sps:$4 sm:$0xff]   ;;  %v3955_v57 = vld [vmem:[#allocation10 + $0xac] ss:$16 sps:$4 sm:$0xff]   ;;  %v113_v8 = vshrl.u32 %v112_v7, 7 }
  0x4b   :  { %325 = vmatpush1.bf16.msra.mxu0 %v3414_v19  ;;  %398 = vmatpush1.bf16.msra.mxu1 %v3415_v20  ;;  %v3953_v56 = vld [vmem:[#allocation10 + $0xa4] ss:$16 sps:$4 sm:$0xff]   ;;  %v3961_v58 = vld [vmem:[#allocation10 + $0xa0] ss:$16 sps:$4 sm:$0xff]   ;;  %v3963_v59 = vld [vmem:[#allocation10 + $0xa8] ss:$16 sps:$4 sm:$0xff]  }
  0x4c   :  { %326 = vmatprep.subr.bf16.mxu0 %v3416_v21  ;;  %399 = vmatprep.subr.bf16.mxu1 %v3418_v22  ;;  %v3965_v60 = vld [vmem:[#allocation10 + $0xc4] ss:$16 sps:$4 sm:$0xff]   ;;  %v3967_v61 = vld [vmem:[#allocation10 + $0xcc] ss:$16 sps:$4 sm:$0xff]   ;;  %v3975_v63 = vld [vmem:[#allocation10 + $0xc0] ss:$16 sps:$4 sm:$0xff]  }
  0x4d   :  { %v3473_v62 = vld [vmem:[#allocation5 + $0x18] sm:$0xff]   ;;  %v3979_v2 = vld [vmem:[#allocation10 + $0xe4] ss:$16 sps:$4 sm:$0xff]   ;;  %v3989_v4 = vld [vmem:[#allocation10 + $0xe0] ss:$16 sps:$4 sm:$0xff]   ;;  %v122_v9 = vsub.s32 2, %v113_v8 }
  0x4e   :  { %v3977_v1 = vld [vmem:[#allocation10 + $0xc8] ss:$16 sps:$4 sm:$0xff]   ;;  %v3985_v3 = vld [vmem:[#allocation10 + $0xec] ss:$16 sps:$4 sm:$0xff]   ;;  %v126_v10 = vsub.s32 3, %v113_v8  ;;  %v114_v11 = vsub.s32 0, %v113_v8 }
  0x4f   :  { %327 = vmatpush1.bf16.msra.mxu0 %v3420_v23  ;;  %400 = vmatpush1.bf16.msra.mxu1 %v3421_v24  ;;  %v3991_v5 = vld [vmem:[#allocation10 + $0xe8] ss:$16 sps:$4 sm:$0xff]   ;;  %v110_v12 = vld [vmem:[%s4491_s3] sm:$0xf]  ;;  %v118_v13 = vsub.s32 1, %v113_v8  ;;  %s3811_s3 = smov [#allocation12]  }
  0x50   :  { %328 = vmatprep.subr.bf16.mxu0 %v3422_v25  ;;  %401 = vmatprep.subr.bf16.mxu1 %v3424_v26  ;;  %v4038_v14 = vrot.slane %v110_v12, %v122_v9  ;;  %v4044_v17 = vrot.slane %v110_v12, %v126_v10  ;;  %v115_v18 = vrot.slane %v110_v12, %v114_v11  ;;  %s3029_s8 = sshll.u32 %s3811_s3, 4  ;;  %s3812_s13 = smov [#allocation11]   ;;  %s3030_s8 = int_to_ptr.vmem [resolvable:$true] %s3029_s8 }
  0x51   :  { %v119_v21 = vrot.slane %v110_v12, %v118_v13  ;;  %s3016_s14 = sshll.u32 %s3812_s13, 4  ;;  %s3813_s15 = smov [#allocation14]   ;;  %s4438_s14 = int_to_ptr.vmem [resolvable:$true] %s3016_s14 }
  0x52   :  { %s3039_s16 = sshll.u32 %s3813_s15, 4  ;;  %s3728_s17 = scalar_lea.vmem %s3030_s8, 128  ;;  %s4440_s16 = int_to_ptr.vmem [resolvable:$true] %s3039_s16 }
  0x53   :  { %329 = vmatpush1.bf16.msra.mxu0 %v3426_v27  ;;  %402 = vmatpush1.bf16.msra.mxu1 %v3427_v28  ;;  %p3729_p10 = scmp.ne.s32.totalorder %s3030_s8, %s3728_s17  ;;  %p3733_p11 = scmp.lt.s32.totalorder %s3030_s8, %s3030_s8 }
  0x54   :  { %330 = vmatprep.subr.bf16.mxu0 %v3428_v29  ;;  %403 = vmatprep.subr.bf16.mxu1 %v3430_v30  ;;  %p3734_p12 = scmp.lt.s32.totalorder %s3728_s17, %s3728_s17 }
  0x56   :  { %p3735_p13 = por %p3734_p12, %p3733_p11 }
  0x57   :  { %331 = vmatpush1.bf16.msra.mxu0 %v3432_v31  ;;  %404 = vmatpush1.bf16.msra.mxu1 %v3433_v32 }
  0x58   :  { %693 = vmatprep.subr.bf16.mxu0 %v3895_v33  ;;  %734 = vmatprep.subr.bf16.mxu1 %v3897_v34  ;;  %p3736_p0 = pnand %p3735_p13, %p3729_p10 }
  0x5a   :  { %349 = vmatmul.mubr.bf16.vlgmr.msra.gmra.mrb[0].mxu0 %v3434_v35  ;;  %422 = vmatmul.mubr.bf16.vlgmr.msra.gmra.mrb[0].mxu1 %v3434_v35 }
  0x5b   :  { %694 = vmatpush1.bf16.msra.mxu0 %v3899_v36  ;;  %735 = vmatpush1.bf16.msra.mxu1 %v3901_v37 }
  0x5c   :  { %695 = vmatprep.subr.bf16.mxu0 %v3905_v38  ;;  %736 = vmatprep.subr.bf16.mxu1 %v3907_v39 }
  0x5d   :  { %358 = vmatprep.mubr.bf16.mxu0 %v4495_v0  ;;  %431 = vmatprep.mubr.bf16.mxu1 %v4495_v0 }
  0x5f   :  { %696 = vmatpush1.bf16.msra.mxu0 %v3909_v40  ;;  %737 = vmatpush1.bf16.msra.mxu1 %v3913_v41 }
  0x60   :  { %697 = vmatprep.subr.bf16.mxu0 %v3917_v42  ;;  %738 = vmatprep.subr.bf16.mxu1 %v3919_v43 }
  0x62   :  { %359 = vmatmul.mubr.bf16.gmra.mrb[4].mxu0 %v3447_v44  ;;  %432 = vmatmul.mubr.bf16.gmra.mrb[4].mxu1 %v3447_v44 }
  0x63   :  { %698 = vmatpush1.bf16.msra.mxu0 %v3923_v45  ;;  %739 = vmatpush1.bf16.msra.mxu1 %v3925_v46 }
  0x64   :  { %699 = vmatprep.subr.bf16.mxu0 %v3929_v47  ;;  %740 = vmatprep.subr.bf16.mxu1 %v3933_v48 }
  0x65   :  { %368 = vmatprep.mubr.bf16.mxu0 %v4495_v0  ;;  %441 = vmatprep.mubr.bf16.mxu1 %v4495_v0 }
  0x67   :  { %700 = vmatpush1.bf16.msra.mxu0 %v3935_v49  ;;  %741 = vmatpush1.bf16.msra.mxu1 %v3937_v50 }
  0x68   :  { %701 = vmatprep.subr.bf16.mxu0 %v3941_v51  ;;  %742 = vmatprep.subr.bf16.mxu1 %v3945_v52 }
  0x6a   :  { %369 = vmatmul.mubr.bf16.gmra.mrb[8].mxu0 %v3460_v53  ;;  %442 = vmatmul.mubr.bf16.gmra.mrb[8].mxu1 %v3460_v53 }
  0x6b   :  { %702 = vmatpush1.bf16.msra.mxu0 %v3949_v54  ;;  %743 = vmatpush1.bf16.msra.mxu1 %v3951_v55 }
  0x6c   :  { %703 = vmatprep.subr.bf16.mxu0 %v3953_v56  ;;  %744 = vmatprep.subr.bf16.mxu1 %v3955_v57 }
  0x6d   :  { %378 = vmatprep.mubr.bf16.mxu0 %v4495_v0  ;;  %451 = vmatprep.mubr.bf16.mxu1 %v4495_v0 }
  0x6f   :  { %704 = vmatpush1.bf16.msra.mxu0 %v3961_v58  ;;  %745 = vmatpush1.bf16.msra.mxu1 %v3963_v59 }
  0x70   :  { %705 = vmatprep.subr.bf16.mxu0 %v3965_v60  ;;  %746 = vmatprep.subr.bf16.mxu1 %v3967_v61 }
  0x72   :  { %379 = vmatmul.mubr.bf16.gmra.mrb[12].mxu0 %v3473_v62  ;;  %452 = vmatmul.mubr.bf16.gmra.mrb[12].mxu1 %v3473_v62 }
  0x73   :  { %706 = vmatpush1.bf16.msra.mxu0 %v3975_v63  ;;  %747 = vmatpush1.bf16.msra.mxu1 %v3977_v1 }
  0x74   :  { %707 = vmatprep.subr.bf16.mxu0 %v3979_v2  ;;  %748 = vmatprep.subr.bf16.mxu1 %v3985_v3 }
  0x75   :  { %725 = vmatprep.mubr.bf16.mxu0 %v4495_v0  ;;  %766 = vmatprep.mubr.bf16.mxu1 %v4495_v0 }
  0x77   :  { %708 = vmatpush1.bf16.msra.mxu0 %v3989_v4  ;;  %749 = vmatpush1.bf16.msra.mxu1 %v3991_v5 }
  0x78   :  { %1006 = vmatprep.subr.bf16.mxu0 %v3895_v33  ;;  %1047 = vmatprep.subr.bf16.mxu1 %v3897_v34 }
  0x7a   :  { %726 = vmatmul.mubr.bf16.vlgmr.msra.gmra.mrb[16].mxu0 %v3810_v6  ;;  %767 = vmatmul.mubr.bf16.vlgmr.msra.gmra.mrb[16].mxu1 %v3810_v6 }
  0x7b   :  { %1007 = vmatpush1.bf16.msra.mxu0 %v3899_v36  ;;  %1048 = vmatpush1.bf16.msra.mxu1 %v3901_v37 }
  0x7c   :  { %1008 = vmatprep.subr.bf16.mxu0 %v3905_v38  ;;  %1049 = vmatprep.subr.bf16.mxu1 %v3907_v39 }
  0x7d   :  { %1038 = vmatprep.mubr.bf16.mxu0 %v4495_v0  ;;  %1079 = vmatprep.mubr.bf16.mxu1 %v4495_v0 }
  0x7f   :  { %1009 = vmatpush1.bf16.msra.mxu0 %v3909_v40  ;;  %1050 = vmatpush1.bf16.msra.mxu1 %v3913_v41 }
  0x80   :  { %1010 = vmatprep.subr.bf16.mxu0 %v3917_v42  ;;  %1051 = vmatprep.subr.bf16.mxu1 %v3919_v43 }
  0x83   :  { %1011 = vmatpush1.bf16.msra.mxu0 %v3923_v45  ;;  %1052 = vmatpush1.bf16.msra.mxu1 %v3925_v46 }
  0x84   :  { %1012 = vmatprep.subr.bf16.mxu0 %v3929_v47  ;;  %1053 = vmatprep.subr.bf16.mxu1 %v3933_v48 }
  0x87   :  { %1013 = vmatpush1.bf16.msra.mxu0 %v3935_v49  ;;  %1054 = vmatpush1.bf16.msra.mxu1 %v3937_v50 }
  0x88   :  { %1014 = vmatprep.subr.bf16.mxu0 %v3941_v51  ;;  %1055 = vmatprep.subr.bf16.mxu1 %v3945_v52 }
  0x8b   :  { %1015 = vmatpush1.bf16.msra.mxu0 %v3949_v54  ;;  %1056 = vmatpush1.bf16.msra.mxu1 %v3951_v55 }
  0x8c   :  { %1016 = vmatprep.subr.bf16.mxu0 %v3953_v56  ;;  %1057 = vmatprep.subr.bf16.mxu1 %v3955_v57 }
  0x8f   :  { %1017 = vmatpush1.bf16.msra.mxu0 %v3961_v58  ;;  %1058 = vmatpush1.bf16.msra.mxu1 %v3963_v59 }
  0x90   :  { %1018 = vmatprep.subr.bf16.mxu0 %v3965_v60  ;;  %1059 = vmatprep.subr.bf16.mxu1 %v3967_v61 }
  0x93   :  { %1019 = vmatpush1.bf16.msra.mxu0 %v3975_v63  ;;  %1060 = vmatpush1.bf16.msra.mxu1 %v3977_v1 }
  0x94   :  { %1020 = vmatprep.subr.bf16.mxu0 %v3979_v2  ;;  %1061 = vmatprep.subr.bf16.mxu1 %v3985_v3 }
  0x97   :  { %1021 = vmatpush1.bf16.msra.mxu0 %v3989_v4  ;;  %1062 = vmatpush1.bf16.msra.mxu1 %v3991_v5 }
  0x98   :  { %1320 = vmatprep.subr.bf16.mxu0 %v3895_v33  ;;  %1361 = vmatprep.subr.bf16.mxu1 %v3897_v34 }
 0x12d   :  { %v4040_v15 = vpop.f32.mrb[0].mxu0  ;;  %v4042_v16 = vpop.f32.mrb[0].mxu1 }
 0x12e   :  { %v352_v19 = vpop.f32.mrb[1].mxu0  ;;  %v425_v20 = vpop.f32.mrb[1].mxu1 }
 0x12f   :  { %v354_v22 = vpop.f32.mrb[2].mxu0  ;;  %v427_v23 = vpop.f32.mrb[2].mxu1 }
 0x130   :  { %v4046_v24 = vadd.f32 %v354_v22, %v115_v18  ;;  %v356_v25 = vpop.f32.mrb[3].mxu0  ;;  %v4049_v26 = vadd.f32 %v427_v23, %v4038_v14  ;;  %v429_v27 = vpop.f32.mrb[3].mxu1 }
 0x131   :  { %v4051_v28 = vadd.f32 %v356_v25, %v119_v21  ;;  %v4054_v29 = vadd.f32 %v429_v27, %v4044_v17 }
 0x135   :  { %v360_v30 = vpop.f32.mrb[4].mxu0  ;;  %v433_v31 = vpop.f32.mrb[4].mxu1 }
 0x136   :  { %v4056_v32 = vadd.f32 %v360_v30, %v115_v18  ;;  %v362_v35 = vpop.f32.mrb[5].mxu0  ;;  %v4059_v44 = vadd.f32 %v433_v31, %v4038_v14  ;;  %v435_v53 = vpop.f32.mrb[5].mxu1 }
 0x137   :  { %v4061_v62 = vadd.f32 %v362_v35, %v119_v21  ;;  %v364_v6 = vpop.f32.mrb[6].mxu0  ;;  %v4064_v7 = vadd.f32 %v435_v53, %v4044_v17  ;;  %v437_v8 = vpop.f32.mrb[6].mxu1 }
 0x138   :  { %v4066_v9 = vadd.f32 %v364_v6, %v115_v18  ;;  %v366_v10 = vpop.f32.mrb[7].mxu0  ;;  %v4069_v11 = vadd.f32 %v437_v8, %v4038_v14  ;;  %v439_v12 = vpop.f32.mrb[7].mxu1 }
 0x139   :  { %4497 = vst [vmem:[#allocation19_spill] sm:$0xff] %v4064_v7  ;;  %v4071_v13 = vadd.f32 %v366_v10, %v119_v21  ;;  %v4074_v22 = vadd.f32 %v439_v12, %v4044_v17 }
 0x13a   :  { %4498 = vst [vmem:[#allocation20_spill] sm:$0xff] %v4066_v9  ;;  %4499 = vst [vmem:[#allocation21_spill] sm:$0xff] %v4069_v11 }
 0x13b   :  { %4500 = vst [vmem:[#allocation22_spill] sm:$0xff] %v4071_v13  ;;  %4501 = vst [vmem:[#allocation23_spill] sm:$0xff] %v4074_v22 }
 0x13d   :  { %v370_v23 = vpop.f32.mrb[8].mxu0  ;;  %v443_v25 = vpop.f32.mrb[8].mxu1 }
 0x13e   :  { %v4076_v27 = vadd.f32 %v370_v23, %v115_v18  ;;  %v372_v30 = vpop.f32.mrb[9].mxu0  ;;  %v4079_v31 = vadd.f32 %v443_v25, %v4038_v14  ;;  %v445_v35 = vpop.f32.mrb[9].mxu1 }
 0x13f   :  { %v4081_v53 = vadd.f32 %v372_v30, %v119_v21  ;;  %v374_v6 = vpop.f32.mrb[10].mxu0  ;;  %v4084_v8 = vadd.f32 %v445_v35, %v4044_v17  ;;  %v447_v10 = vpop.f32.mrb[10].mxu1 }
 0x140   :  { %4502 = vst [vmem:[#allocation24_spill] sm:$0xff] %v4076_v27  ;;  %4503 = vst [vmem:[#allocation25_spill] sm:$0xff] %v4079_v31  ;;  %v4086_v0 = vadd.f32 %v374_v6, %v115_v18  ;;  %v376_v12 = vpop.f32.mrb[11].mxu0  ;;  %v4089_v22 = vadd.f32 %v447_v10, %v4038_v14  ;;  %v449_v23 = vpop.f32.mrb[11].mxu1 }
 0x141   :  { %4504 = vst [vmem:[#allocation26_spill] sm:$0xff] %v4081_v53  ;;  %4505 = vst [vmem:[#allocation27_spill] sm:$0xff] %v4084_v8  ;;  %v4091_v27 = vadd.f32 %v376_v12, %v119_v21  ;;  %v4094_v25 = vadd.f32 %v449_v23, %v4044_v17 }
 0x142   :  { %4506 = vst [vmem:[#allocation28_spill] sm:$0xff] %v4086_v0  ;;  %4507 = vst [vmem:[#allocation29_spill] sm:$0xff] %v4089_v22 }
 0x143   :  { %4508 = vst [vmem:[#allocation30_spill] sm:$0xff] %v4091_v27  ;;  %4509 = vst [vmem:[#allocation31_spill] sm:$0xff] %v4094_v25 }
 0x145   :  { %v380_v31 = vpop.f32.mrb[12].mxu0  ;;  %v453_v30 = vpop.f32.mrb[12].mxu1 }
 0x146   :  { %v4096_v53 = vadd.f32 %v380_v31, %v115_v18  ;;  %v382_v13 = vpop.f32.mrb[13].mxu0  ;;  %v4099_v35 = vadd.f32 %v453_v30, %v4038_v14  ;;  %v455_v6 = vpop.f32.mrb[13].mxu1 }
 0x147   :  { %v4101_v0 = vadd.f32 %v382_v13, %v119_v21  ;;  %v384_v8 = vpop.f32.mrb[14].mxu0  ;;  %v4104_v10 = vadd.f32 %v455_v6, %v4044_v17  ;;  %v457_v12 = vpop.f32.mrb[14].mxu1  ;;  %v351_v13 = vadd.f32 %v4040_v15, %v115_v18  ;;  %v353_v6 = vadd.f32 %v352_v19, %v119_v21 }
 0x148   :  { %4510 = vst [vmem:[#allocation32_spill] sm:$0xff] %v4096_v53  ;;  %4511 = vst [vmem:[#allocation33_spill] sm:$0xff] %v4099_v35  ;;  %v4106_v27 = vadd.f32 %v384_v8, %v115_v18  ;;  %v386_v23 = vpop.f32.mrb[15].mxu0  ;;  %v4109_v25 = vadd.f32 %v457_v12, %v4038_v14  ;;  %v459_v31 = vpop.f32.mrb[15].mxu1 }
 0x149   :  { %4512 = vst [vmem:[#allocation34_spill] sm:$0xff] %v4101_v0  ;;  %4513 = vst [vmem:[#allocation35_spill] sm:$0xff] %v4104_v10  ;;  %v4111_v53 = vadd.f32 %v386_v23, %v119_v21  ;;  %v4114_v30 = vadd.f32 %v459_v31, %v4044_v17  ;;  %v424_v0 = vadd.f32 %v4042_v16, %v4038_v14 }
 0x14a   :  { %4514 = vst [vmem:[#allocation36_spill] sm:$0xff] %v4106_v27  ;;  %4515 = vst [vmem:[#allocation37_spill] sm:$0xff] %v4109_v25  ;;  %v426_v10 = vadd.f32 %v425_v20, %v4044_v17 }
 0x14b   :  { %4516 = vst [vmem:[#allocation38_spill] sm:$0xff] %v4111_v53  ;;  %4517 = vst [vmem:[#allocation39_spill] sm:$0xff] %v4114_v30 }
 0x14d   :  { %v727_v8 = vpop.f32.mrb[16].mxu0  ;;  %v768_v27 = vpop.f32.mrb[16].mxu1 }
 0x14e   :  { %v775_v35 = vadd.f32 %v727_v8, %v351_v13  ;;  %v777_v22 = vadd.f32 %v768_v27, %v424_v0  ;;  %v729_v12 = vpop.f32.mrb[17].mxu0  ;;  %v770_v25 = vpop.f32.mrb[17].mxu1 }
 0x14f   :  { %v776_v11 = vadd.f32 %v729_v12, %v353_v6  ;;  %v778_v23 = vadd.f32 %v770_v25, %v426_v10  ;;  %v731_v53 = vpop.f32.mrb[18].mxu0  ;;  %v772_v9 = vpop.f32.mrb[18].mxu1 }
 0x150   :  { %v3124_v31 = vmul.f32 -1.442695, %v775_v35  ;;  %v732_v30 = vpop.f32.mrb[19].mxu0  ;;  %v773_v7 = vpop.f32.mrb[19].mxu1  ;;  %v3126_v14 = vmul.f32 -1.442695, %v777_v22 }
 0x151   :  { %v3125_v15 = vmul.f32 -1.442695, %v776_v11  ;;  %v4518_v30 = vmov 0  }
 0x152   :  { %3534 = vpow2.f32 %v3124_v31 }
 0x153   :  { %3536 = vpow2.f32 %v3125_v15 }
 0x154   :  { %3538 = vtanh.f32 %v778_v23 }
 0x155   :  { %3540 = vpow2.f32 %v3126_v14 }
 0x15c   :  { %v3535_v16 = vpop.eup %3534 }
 0x15d   :  { %v788_v18 = vadd.f32 1.0, %v3535_v16  ;;  %v3537_v17 = vpop.eup %3536 }
 0x15e   :  { %v789_v0 = vadd.f32 1.0, %v3537_v17  ;;  %v3539_v19 = vpop.eup %3538 }
 0x15f   :  { %3542 = vrcp.f32 %v788_v18  ;;  %v3541_v20 = vpop.eup %3540 }
 0x160   :  { %3544 = vrcp.f32 %v789_v0  ;;  %v790_v53 = vadd.f32 1.0, %v3541_v20 }
 0x162   :  { %3546 = vrcp.f32 %v790_v53 }
 0x169   :  { %v3543_v21 = vpop.eup %3542 }
 0x16a   :  { %v799_v27 = vmul.f32 %v3543_v21, %v3539_v19  ;;  %v3545_v9 = vpop.eup %3544 }
 0x16b   :  { %v798_v25 = vmul.f32 0.0, %v3545_v9 }
 0x16c   :  { %v3547_v11 = vpop.eup %3546 }
 0x16d   :  { %v4120_v7 = vadd.f32 %v799_v27, %v798_v25 }
 0x16f   :  { %3548 = vtanh.f32 %v4120_v7 }
 0x179   :  { %v3549_v22 = vpop.eup %3548 }
 0x17a   :  { %v802_v35 = vmul.f32 %v3549_v22, %v3547_v11 }
 0x17c   :  { %805 = vst [vmem:[#allocation11] sm:$0xff] %v802_v35  ;;  %v813_v10 = vpack.c.bf16 %v802_v35, %v802_v35 }
 0x17e   :  { %1039 = vmatmul.mubr.bf16.vlgmr.msra.gmra.mrb[20].mxu0 %v813_v10  ;;  %1080 = vmatmul.mubr.bf16.vlgmr.msra.gmra.mrb[20].mxu1 %v813_v10 }
 0x17f   :  { %1321 = vmatpush1.bf16.msra.mxu0 %v3899_v36  ;;  %1362 = vmatpush1.bf16.msra.mxu1 %v3901_v37 }
 0x180   :  { %1322 = vmatprep.subr.bf16.mxu0 %v3905_v38  ;;  %1363 = vmatprep.subr.bf16.mxu1 %v3907_v39 }
 0x181   :  { %1352 = vmatprep.mubr.bf16.mxu0 %v4518_v30  ;;  %1393 = vmatprep.mubr.bf16.mxu1 %v4518_v30 }
 0x183   :  { %1323 = vmatpush1.bf16.msra.mxu0 %v3909_v40  ;;  %1364 = vmatpush1.bf16.msra.mxu1 %v3913_v41 }
 0x184   :  { %1324 = vmatprep.subr.bf16.mxu0 %v3917_v42  ;;  %1365 = vmatprep.subr.bf16.mxu1 %v3919_v43 }
 0x187   :  { %1325 = vmatpush1.bf16.msra.mxu0 %v3923_v45  ;;  %1366 = vmatpush1.bf16.msra.mxu1 %v3925_v46 }
 0x188   :  { %1326 = vmatprep.subr.bf16.mxu0 %v3929_v47  ;;  %1367 = vmatprep.subr.bf16.mxu1 %v3933_v48 }
 0x18b   :  { %1327 = vmatpush1.bf16.msra.mxu0 %v3935_v49  ;;  %1368 = vmatpush1.bf16.msra.mxu1 %v3937_v50 }
 0x18c   :  { %1328 = vmatprep.subr.bf16.mxu0 %v3941_v51  ;;  %1369 = vmatprep.subr.bf16.mxu1 %v3945_v52 }
 0x18f   :  { %1329 = vmatpush1.bf16.msra.mxu0 %v3949_v54  ;;  %1370 = vmatpush1.bf16.msra.mxu1 %v3951_v55 }
 0x190   :  { %1330 = vmatprep.subr.bf16.mxu0 %v3953_v56  ;;  %1371 = vmatprep.subr.bf16.mxu1 %v3955_v57 }
 0x193   :  { %1331 = vmatpush1.bf16.msra.mxu0 %v3961_v58  ;;  %1372 = vmatpush1.bf16.msra.mxu1 %v3963_v59 }
 0x194   :  { %1332 = vmatprep.subr.bf16.mxu0 %v3965_v60  ;;  %1373 = vmatprep.subr.bf16.mxu1 %v3967_v61 }
 0x197   :  { %1333 = vmatpush1.bf16.msra.mxu0 %v3975_v63  ;;  %1374 = vmatpush1.bf16.msra.mxu1 %v3977_v1 }
 0x198   :  { %1334 = vmatprep.subr.bf16.mxu0 %v3979_v2  ;;  %1375 = vmatprep.subr.bf16.mxu1 %v3985_v3 }
 0x19b   :  { %1335 = vmatpush1.bf16.msra.mxu0 %v3989_v4  ;;  %1376 = vmatpush1.bf16.msra.mxu1 %v3991_v5 }
 0x19c   :  { %1634 = vmatprep.subr.bf16.mxu0 %v3895_v33  ;;  %1675 = vmatprep.subr.bf16.mxu1 %v3897_v34 }
 0x251   :  { %v1040_v13 = vpop.f32.mrb[20].mxu0  ;;  %v1081_v6 = vpop.f32.mrb[20].mxu1 }
 0x252   :  { %v1088_v8 = vadd.f32 %v1040_v13, %v4046_v24  ;;  %v1090_v12 = vadd.f32 %v1081_v6, %v4049_v26  ;;  %v1042_v23 = vpop.f32.mrb[21].mxu0  ;;  %v1083_v31 = vpop.f32.mrb[21].mxu1 }
 0x253   :  { %v1089_v15 = vadd.f32 %v1042_v23, %v4051_v28  ;;  %v1091_v14 = vadd.f32 %v1083_v31, %v4054_v29  ;;  %v1044_v16 = vpop.f32.mrb[22].mxu0  ;;  %v1085_v18 = vpop.f32.mrb[22].mxu1  ;;  %v4219_v23 = vld [vmem:[#allocation10 + $0x24] ss:$16 sps:$4 sm:$0xff]   ;;  %v4221_v31 = vld [vmem:[#allocation10 + $0x2c] ss:$16 sps:$4 sm:$0xff]  }
 0x254   :  { %v3159_v17 = vmul.f32 -1.442695, %v1088_v8  ;;  %v1045_v0 = vpop.f32.mrb[23].mxu0  ;;  %v1086_v19 = vpop.f32.mrb[23].mxu1  ;;  %v3161_v34 = vmul.f32 -1.442695, %v1090_v12 }
 0x255   :  { %v3160_v33 = vmul.f32 -1.442695, %v1089_v15  ;;  %v4211_v8 = vld [vmem:[#allocation10] ss:$16 sps:$4 sm:$0xff]   ;;  %v4213_v12 = vld [vmem:[#allocation10 + $0x8] ss:$16 sps:$4 sm:$0xff]  }
 0x256   :  { %3550 = vpow2.f32 %v3159_v17  ;;  %v4223_v15 = vld [vmem:[#allocation10 + $0x20] ss:$16 sps:$4 sm:$0xff]   ;;  %v4231_v16 = vld [vmem:[#allocation10 + $0x44] ss:$16 sps:$4 sm:$0xff]   ;;  %v4233_v18 = vld [vmem:[#allocation10 + $0x4c] ss:$16 sps:$4 sm:$0xff]  }
 0x257   :  { %3552 = vpow2.f32 %v3160_v33  ;;  %v4235_v17 = vld [vmem:[#allocation10 + $0x40] ss:$16 sps:$4 sm:$0xff]   ;;  %v4237_v0 = vld [vmem:[#allocation10 + $0x48] ss:$16 sps:$4 sm:$0xff]   ;;  %v4243_v19 = vld [vmem:[#allocation10 + $0x64] ss:$16 sps:$4 sm:$0xff]  }
 0x258   :  { %3554 = vtanh.f32 %v1091_v14  ;;  %v4225_v14 = vld [vmem:[#allocation10 + $0x28] ss:$16 sps:$4 sm:$0xff]   ;;  %v4245_v33 = vld [vmem:[#allocation10 + $0x6c] ss:$16 sps:$4 sm:$0xff]  }
 0x259   :  { %3556 = vpow2.f32 %v3161_v34  ;;  %v4247_v34 = vld [vmem:[#allocation10 + $0x60] ss:$16 sps:$4 sm:$0xff]  }
 0x260   :  { %v3551_v20 = vpop.eup %3550 }
 0x261   :  { %v1101_v21 = vadd.f32 1.0, %v3551_v20  ;;  %v3553_v24 = vpop.eup %3552  ;;  %v4249_v20 = vld [vmem:[#allocation10 + $0x68] ss:$16 sps:$4 sm:$0xff]  }
 0x262   :  { %v1102_v26 = vadd.f32 1.0, %v3553_v24  ;;  %v3555_v28 = vpop.eup %3554  ;;  %v4257_v24 = vld [vmem:[#allocation10 + $0x8c] ss:$16 sps:$4 sm:$0xff]  }
 0x263   :  { %3558 = vrcp.f32 %v1101_v21  ;;  %v3557_v27 = vpop.eup %3556  ;;  %v4255_v21 = vld [vmem:[#allocation10 + $0x84] ss:$16 sps:$4 sm:$0xff]  }
 0x264   :  { %3560 = vrcp.f32 %v1102_v26  ;;  %v1103_v25 = vadd.f32 1.0, %v3557_v27  ;;  %v4259_v26 = vld [vmem:[#allocation10 + $0x80] ss:$16 sps:$4 sm:$0xff]  }
 0x265   :  { %v4267_v27 = vld [vmem:[#allocation10 + $0xa0] ss:$16 sps:$4 sm:$0xff]  }
 0x266   :  { %3562 = vrcp.f32 %v1103_v25  ;;  %v4275_v25 = vld [vmem:[#allocation10 + $0xc4] ss:$16 sps:$4 sm:$0xff]  }
 0x26d   :  { %v3559_v29 = vpop.eup %3558 }
 0x26e   :  { %v1112_v9 = vmul.f32 %v3559_v29, %v3555_v28  ;;  %v3561_v53 = vpop.eup %3560  ;;  %v4261_v28 = vld [vmem:[#allocation10 + $0x88] ss:$16 sps:$4 sm:$0xff]   ;;  %v4269_v29 = vld [vmem:[#allocation10 + $0xa4] ss:$16 sps:$4 sm:$0xff]  }
 0x26f   :  { %v1111_v11 = vmul.f32 %v3561_v53, %v4120_v7  ;;  %v4209_v7 = vld [vmem:[#allocation10 + $0xc] ss:$16 sps:$4 sm:$0xff]  }
 0x270   :  { %v3563_v35 = vpop.eup %3562  ;;  %v4273_v53 = vld [vmem:[#allocation10 + $0xac] ss:$16 sps:$4 sm:$0xff]  }
 0x271   :  { %v4162_v22 = vadd.f32 %v1112_v9, %v1111_v11  ;;  %v4271_v9 = vld [vmem:[#allocation10 + $0xa8] ss:$16 sps:$4 sm:$0xff]   ;;  %v4278_v11 = vld [vmem:[#allocation10 + $0xcc] ss:$16 sps:$4 sm:$0xff]  }
 0x273   :  { %3564 = vtanh.f32 %v4162_v22 }
 0x27d   :  { %v3565_v10 = vpop.eup %3564 }
 0x27e   :  { %v1115_v13 = vmul.f32 %v3565_v10, %v3563_v35  ;;  %v4285_v35 = vld [vmem:[#allocation10 + $0xc8] ss:$16 sps:$4 sm:$0xff]   ;;  %v4289_v10 = vld [vmem:[#allocation10 + $0xe4] ss:$16 sps:$4 sm:$0xff]  }
 0x280   :  { %1119 = vst [vmem:[#allocation11 + $0x8] sm:$0xff] %v1115_v13  ;;  %v1127_v6 = vpack.c.bf16 %v1115_v13, %v1115_v13  ;;  %v4291_v13 = vld [vmem:[#allocation10 + $0xec] ss:$16 sps:$4 sm:$0xff]  }
 0x282   :  { %1353 = vmatmul.mubr.bf16.vlgmr.msra.gmra.mrb[24].mxu0 %v1127_v6  ;;  %1394 = vmatmul.mubr.bf16.vlgmr.msra.gmra.mrb[24].mxu1 %v1127_v6  ;;  %v4295_v6 = vld [vmem:[#allocation10 + $0xe0] ss:$16 sps:$4 sm:$0xff]  }
 0x283   :  { %1635 = vmatpush1.bf16.msra.mxu0 %v3899_v36  ;;  %1676 = vmatpush1.bf16.msra.mxu1 %v3901_v37 }
 0x284   :  { %1636 = vmatprep.subr.bf16.mxu0 %v3905_v38  ;;  %1677 = vmatprep.subr.bf16.mxu1 %v3907_v39 }
 0x285   :  { %1666 = vmatprep.mubr.bf16.mxu0 %v4518_v30  ;;  %1707 = vmatprep.mubr.bf16.mxu1 %v4518_v30 }
 0x287   :  { %1637 = vmatpush1.bf16.msra.mxu0 %v3909_v40  ;;  %1678 = vmatpush1.bf16.msra.mxu1 %v3913_v41 }
 0x288   :  { %1638 = vmatprep.subr.bf16.mxu0 %v3917_v42  ;;  %1679 = vmatprep.subr.bf16.mxu1 %v3919_v43  ;;  %v4519_v43 = vld [vmem:[#allocation19_spill] sm:$0xff] }
 0x28b   :  { %1639 = vmatpush1.bf16.msra.mxu0 %v3923_v45  ;;  %1680 = vmatpush1.bf16.msra.mxu1 %v3925_v46 }
 0x28c   :  { %1640 = vmatprep.subr.bf16.mxu0 %v3929_v47  ;;  %1681 = vmatprep.subr.bf16.mxu1 %v3933_v48 }
 0x28f   :  { %1641 = vmatpush1.bf16.msra.mxu0 %v3935_v49  ;;  %1682 = vmatpush1.bf16.msra.mxu1 %v3937_v50 }
 0x290   :  { %1642 = vmatprep.subr.bf16.mxu0 %v3941_v51  ;;  %1683 = vmatprep.subr.bf16.mxu1 %v3945_v52 }
 0x293   :  { %1643 = vmatpush1.bf16.msra.mxu0 %v3949_v54  ;;  %1684 = vmatpush1.bf16.msra.mxu1 %v3951_v55 }
 0x294   :  { %1644 = vmatprep.subr.bf16.mxu0 %v3953_v56  ;;  %1685 = vmatprep.subr.bf16.mxu1 %v3955_v57 }
 0x297   :  { %1645 = vmatpush1.bf16.msra.mxu0 %v3961_v58  ;;  %1686 = vmatpush1.bf16.msra.mxu1 %v3963_v59 }
 0x298   :  { %1646 = vmatprep.subr.bf16.mxu0 %v3965_v60  ;;  %1687 = vmatprep.subr.bf16.mxu1 %v3967_v61 }
 0x29b   :  { %1647 = vmatpush1.bf16.msra.mxu0 %v3975_v63  ;;  %1688 = vmatpush1.bf16.msra.mxu1 %v3977_v1 }
 0x29c   :  { %1648 = vmatprep.subr.bf16.mxu0 %v3979_v2  ;;  %1689 = vmatprep.subr.bf16.mxu1 %v3985_v3 }
 0x29f   :  { %1649 = vmatpush1.bf16.msra.mxu0 %v3989_v4  ;;  %1690 = vmatpush1.bf16.msra.mxu1 %v3991_v5 }
 0x2a0   :  { %1989 = vmatprep.subr.bf16.mxu1 %v4209_v7 }
 0x355   :  { %v1354_v36 = vpop.f32.mrb[24].mxu0  ;;  %v1395_v37 = vpop.f32.mrb[24].mxu1 }
 0x356   :  { %v1402_v38 = vadd.f32 %v1354_v36, %v4056_v32  ;;  %v1404_v39 = vadd.f32 %v1395_v37, %v4059_v44  ;;  %v1356_v40 = vpop.f32.mrb[25].mxu0  ;;  %v1397_v41 = vpop.f32.mrb[25].mxu1  ;;  %v4297_v36 = vld [vmem:[#allocation10 + $0xe8] ss:$16 sps:$4 sm:$0xff]  }
 0x357   :  { %v1403_v42 = vadd.f32 %v1356_v40, %v4061_v62  ;;  %v1405_v45 = vadd.f32 %v1397_v41, %v4519_v43  ;;  %v1358_v46 = vpop.f32.mrb[26].mxu0  ;;  %v1399_v47 = vpop.f32.mrb[26].mxu1  ;;  %v4207_v62 = vld [vmem:[#allocation10 + $0x4] ss:$16 sps:$4 sm:$0xff]  }
 0x358   :  { %v3194_v48 = vmul.f32 -1.442695, %v1402_v38  ;;  %v1359_v49 = vpop.f32.mrb[27].mxu0  ;;  %v1400_v50 = vpop.f32.mrb[27].mxu1  ;;  %v3196_v52 = vmul.f32 -1.442695, %v1404_v39  ;;  %1948 = vmatprep.subr.bf16.mxu0 %v4207_v62 }
 0x359   :  { %v3195_v51 = vmul.f32 -1.442695, %v1403_v42  ;;  %v4520_v39 = vld [vmem:[#allocation20_spill] sm:$0xff]  ;;  %v4521_v41 = vld [vmem:[#allocation21_spill] sm:$0xff]  ;;  %v4522_v46 = vld [vmem:[#allocation22_spill] sm:$0xff] }
 0x35a   :  { %3566 = vpow2.f32 %v3194_v48  ;;  %v4523_v48 = vld [vmem:[#allocation23_spill] sm:$0xff] }
 0x35b   :  { %3568 = vpow2.f32 %v3195_v51 }
 0x35c   :  { %3570 = vtanh.f32 %v1405_v45 }
 0x35d   :  { %3572 = vpow2.f32 %v3196_v52 }
 0x364   :  { %v3567_v54 = vpop.eup %3566 }
 0x365   :  { %v1415_v55 = vadd.f32 1.0, %v3567_v54  ;;  %v3569_v56 = vpop.eup %3568 }
 0x366   :  { %v1416_v57 = vadd.f32 1.0, %v3569_v56  ;;  %v3571_v58 = vpop.eup %3570 }
 0x367   :  { %3574 = vrcp.f32 %v1415_v55  ;;  %v3573_v59 = vpop.eup %3572 }
 0x368   :  { %3576 = vrcp.f32 %v1416_v57  ;;  %v1417_v1 = vadd.f32 1.0, %v3573_v59 }
 0x36a   :  { %3578 = vrcp.f32 %v1417_v1 }
 0x371   :  { %v3575_v60 = vpop.eup %3574 }
 0x372   :  { %v1426_v61 = vmul.f32 %v3575_v60, %v3571_v58  ;;  %v3577_v63 = vpop.eup %3576 }
 0x373   :  { %v1425_v2 = vmul.f32 %v3577_v63, %v4162_v22  ;;  %v4283_v22 = vld [vmem:[#allocation10 + $0xc0] ss:$16 sps:$4 sm:$0xff]  }
 0x374   :  { %v3579_v4 = vpop.eup %3578 }
 0x375   :  { %v4202_v3 = vadd.f32 %v1426_v61, %v1425_v2 }
 0x377   :  { %3580 = vtanh.f32 %v4202_v3 }
 0x381   :  { %v3581_v5 = vpop.eup %3580 }
 0x382   :  { %v1429_v32 = vmul.f32 %v3581_v5, %v3579_v4 }
 0x384   :  { %1433 = vst [vmem:[#allocation11 + $0x10] sm:$0xff] %v1429_v32  ;;  %v1441_v44 = vpack.c.bf16 %v1429_v32, %v1429_v32 }
 0x386   :  { %1667 = vmatmul.mubr.bf16.vlgmr.msra.gmra.mrb[28].mxu0 %v1441_v44  ;;  %1708 = vmatmul.mubr.bf16.vlgmr.msra.gmra.mrb[28].mxu1 %v1441_v44 }
 0x387   :  { %1980 = vmatprep.mubr.bf16.mxu0 %v4518_v30  ;;  %2021 = vmatprep.mubr.bf16.mxu1 %v4518_v30 }
 0x388   :  { %1949 = vmatpush1.bf16.msra.mxu0 %v4211_v8  ;;  %1990 = vmatpush1.bf16.msra.mxu1 %v4213_v12 }
 0x389   :  { %1950 = vmatprep.subr.bf16.mxu0 %v4219_v23  ;;  %1991 = vmatprep.subr.bf16.mxu1 %v4221_v31 }
 0x38c   :  { %1951 = vmatpush1.bf16.msra.mxu0 %v4223_v15  ;;  %1992 = vmatpush1.bf16.msra.mxu1 %v4225_v14 }
 0x38d   :  { %1952 = vmatprep.subr.bf16.mxu0 %v4231_v16  ;;  %1993 = vmatprep.subr.bf16.mxu1 %v4233_v18 }
 0x390   :  { %1953 = vmatpush1.bf16.msra.mxu0 %v4235_v17  ;;  %1994 = vmatpush1.bf16.msra.mxu1 %v4237_v0 }
 0x391   :  { %1954 = vmatprep.subr.bf16.mxu0 %v4243_v19  ;;  %1995 = vmatprep.subr.bf16.mxu1 %v4245_v33 }
 0x394   :  { %1955 = vmatpush1.bf16.msra.mxu0 %v4247_v34  ;;  %1996 = vmatpush1.bf16.msra.mxu1 %v4249_v20 }
 0x395   :  { %1956 = vmatprep.subr.bf16.mxu0 %v4255_v21  ;;  %1997 = vmatprep.subr.bf16.mxu1 %v4257_v24 }
 0x398   :  { %1957 = vmatpush1.bf16.msra.mxu0 %v4259_v26  ;;  %1998 = vmatpush1.bf16.msra.mxu1 %v4261_v28 }
 0x399   :  { %1958 = vmatprep.subr.bf16.mxu0 %v4269_v29  ;;  %1999 = vmatprep.subr.bf16.mxu1 %v4273_v53 }
 0x39c   :  { %1959 = vmatpush1.bf16.msra.mxu0 %v4267_v27  ;;  %2000 = vmatpush1.bf16.msra.mxu1 %v4271_v9 }
 0x39d   :  { %1960 = vmatprep.subr.bf16.mxu0 %v4275_v25  ;;  %2001 = vmatprep.subr.bf16.mxu1 %v4278_v11 }
 0x3a0   :  { %1961 = vmatpush1.bf16.msra.mxu0 %v4283_v22  ;;  %2002 = vmatpush1.bf16.msra.mxu1 %v4285_v35 }
 0x3a1   :  { %1962 = vmatprep.subr.bf16.mxu0 %v4289_v10  ;;  %2003 = vmatprep.subr.bf16.mxu1 %v4291_v13 }
 0x3a4   :  { %1963 = vmatpush1.bf16.msra.mxu0 %v4295_v6  ;;  %2004 = vmatpush1.bf16.msra.mxu1 %v4297_v36 }
 0x3a5   :  { %2262 = vmatprep.subr.bf16.mxu0 %v4207_v62  ;;  %2303 = vmatprep.subr.bf16.mxu1 %v4209_v7 }
 0x459   :  { %v1668_v37 = vpop.f32.mrb[28].mxu0  ;;  %v1709_v38 = vpop.f32.mrb[28].mxu1 }
 0x45a   :  { %v1716_v40 = vadd.f32 %v1668_v37, %v4520_v39  ;;  %v1718_v42 = vadd.f32 %v1709_v38, %v4521_v41  ;;  %v1670_v43 = vpop.f32.mrb[29].mxu0  ;;  %v1711_v45 = vpop.f32.mrb[29].mxu1 }
 0x45b   :  { %v1717_v47 = vadd.f32 %v1670_v43, %v4522_v46  ;;  %v1719_v49 = vadd.f32 %v1711_v45, %v4523_v48  ;;  %v1672_v50 = vpop.f32.mrb[30].mxu0  ;;  %v1713_v51 = vpop.f32.mrb[30].mxu1  ;;  %v4524_v43 = vld [vmem:[#allocation24_spill] sm:$0xff]  ;;  %v4525_v46 = vld [vmem:[#allocation25_spill] sm:$0xff] }
 0x45c   :  { %v3229_v52 = vmul.f32 -1.442695, %v1716_v40  ;;  %v1673_v54 = vpop.f32.mrb[31].mxu0  ;;  %v1714_v55 = vpop.f32.mrb[31].mxu1  ;;  %v3231_v57 = vmul.f32 -1.442695, %v1718_v42 }
 0x45d   :  { %v3230_v56 = vmul.f32 -1.442695, %v1717_v47  ;;  %v4526_v50 = vld [vmem:[#allocation26_spill] sm:$0xff] }
 0x45e   :  { %3582 = vpow2.f32 %v3229_v52  ;;  %v4527_v52 = vld [vmem:[#allocation27_spill] sm:$0xff] }
 0x45f   :  { %3584 = vpow2.f32 %v3230_v56 }
 0x460   :  { %3586 = vtanh.f32 %v1719_v49 }
 0x461   :  { %3588 = vpow2.f32 %v3231_v57 }
 0x468   :  { %v3583_v58 = vpop.eup %3582 }
 0x469   :  { %v1729_v59 = vadd.f32 1.0, %v3583_v58  ;;  %v3585_v60 = vpop.eup %3584 }
 0x46a   :  { %v1730_v61 = vadd.f32 1.0, %v3585_v60  ;;  %v3587_v63 = vpop.eup %3586 }
 0x46b   :  { %3590 = vrcp.f32 %v1729_v59  ;;  %v3589_v1 = vpop.eup %3588 }
 0x46c   :  { %3592 = vrcp.f32 %v1730_v61  ;;  %v1731_v32 = vadd.f32 1.0, %v3589_v1 }
 0x46e   :  { %3594 = vrcp.f32 %v1731_v32 }
 0x475   :  { %v3591_v2 = vpop.eup %3590 }
 0x476   :  { %v1740_v4 = vmul.f32 %v3591_v2, %v3587_v63  ;;  %v3593_v5 = vpop.eup %3592 }
 0x477   :  { %v1739_v44 = vmul.f32 %v3593_v5, %v4202_v3 }
 0x478   :  { %v3595_v38 = vpop.eup %3594 }
 0x479   :  { %v4310_v37 = vadd.f32 %v1740_v4, %v1739_v44 }
 0x47b   :  { %3596 = vtanh.f32 %v4310_v37 }
 0x485   :  { %v3597_v39 = vpop.eup %3596 }
 0x486   :  { %v1743_v40 = vmul.f32 %v3597_v39, %v3595_v38 }
 0x488   :  { %1747 = vst [vmem:[#allocation11 + $0x18] sm:$0xff] %v1743_v40  ;;  %v1755_v41 = vpack.c.bf16 %v1743_v40, %v1743_v40 }
 0x48a   :  { %1981 = vmatmul.mubr.bf16.vlgmr.msra.gmra.mrb[32].mxu0 %v1755_v41  ;;  %2022 = vmatmul.mubr.bf16.vlgmr.msra.gmra.mrb[32].mxu1 %v1755_v41 }
 0x48b   :  { %2263 = vmatpush1.bf16.msra.mxu0 %v4211_v8  ;;  %2304 = vmatpush1.bf16.msra.mxu1 %v4213_v12 }
 0x48c   :  { %2264 = vmatprep.subr.bf16.mxu0 %v4219_v23  ;;  %2305 = vmatprep.subr.bf16.mxu1 %v4221_v31 }
 0x48d   :  { %2294 = vmatprep.mubr.bf16.mxu0 %v4518_v30  ;;  %2335 = vmatprep.mubr.bf16.mxu1 %v4518_v30 }
 0x48f   :  { %2265 = vmatpush1.bf16.msra.mxu0 %v4223_v15  ;;  %2306 = vmatpush1.bf16.msra.mxu1 %v4225_v14 }
 0x490   :  { %2266 = vmatprep.subr.bf16.mxu0 %v4231_v16  ;;  %2307 = vmatprep.subr.bf16.mxu1 %v4233_v18 }
 0x493   :  { %2267 = vmatpush1.bf16.msra.mxu0 %v4235_v17  ;;  %2308 = vmatpush1.bf16.msra.mxu1 %v4237_v0 }
 0x494   :  { %2268 = vmatprep.subr.bf16.mxu0 %v4243_v19  ;;  %2309 = vmatprep.subr.bf16.mxu1 %v4245_v33 }
 0x497   :  { %2269 = vmatpush1.bf16.msra.mxu0 %v4247_v34  ;;  %2310 = vmatpush1.bf16.msra.mxu1 %v4249_v20 }
 0x498   :  { %2270 = vmatprep.subr.bf16.mxu0 %v4255_v21  ;;  %2311 = vmatprep.subr.bf16.mxu1 %v4257_v24 }
 0x49b   :  { %2271 = vmatpush1.bf16.msra.mxu0 %v4259_v26  ;;  %2312 = vmatpush1.bf16.msra.mxu1 %v4261_v28 }
 0x49c   :  { %2272 = vmatprep.subr.bf16.mxu0 %v4269_v29  ;;  %2313 = vmatprep.subr.bf16.mxu1 %v4273_v53 }
 0x49f   :  { %2273 = vmatpush1.bf16.msra.mxu0 %v4267_v27  ;;  %2314 = vmatpush1.bf16.msra.mxu1 %v4271_v9 }
 0x4a0   :  { %2274 = vmatprep.subr.bf16.mxu0 %v4275_v25  ;;  %2315 = vmatprep.subr.bf16.mxu1 %v4278_v11 }
 0x4a3   :  { %2275 = vmatpush1.bf16.msra.mxu0 %v4283_v22  ;;  %2316 = vmatpush1.bf16.msra.mxu1 %v4285_v35 }
 0x4a4   :  { %2276 = vmatprep.subr.bf16.mxu0 %v4289_v10  ;;  %2317 = vmatprep.subr.bf16.mxu1 %v4291_v13 }
 0x4a7   :  { %2277 = vmatpush1.bf16.msra.mxu0 %v4295_v6  ;;  %2318 = vmatpush1.bf16.msra.mxu1 %v4297_v36 }
 0x4a8   :  { %2576 = vmatprep.subr.bf16.mxu0 %v4207_v62  ;;  %2617 = vmatprep.subr.bf16.mxu1 %v4209_v7 }
 0x55d   :  { %v1982_v3 = vpop.f32.mrb[32].mxu0  ;;  %v2023_v42 = vpop.f32.mrb[32].mxu1 }
 0x55e   :  { %v2030_v45 = vadd.f32 %v1982_v3, %v4524_v43  ;;  %v2032_v47 = vadd.f32 %v2023_v42, %v4525_v46  ;;  %v1984_v48 = vpop.f32.mrb[33].mxu0  ;;  %v2025_v49 = vpop.f32.mrb[33].mxu1 }
 0x55f   :  { %v2031_v51 = vadd.f32 %v1984_v48, %v4526_v50  ;;  %v2033_v54 = vadd.f32 %v2025_v49, %v4527_v52  ;;  %v1986_v55 = vpop.f32.mrb[34].mxu0  ;;  %v2027_v56 = vpop.f32.mrb[34].mxu1  ;;  %v4528_v48 = vld [vmem:[#allocation28_spill] sm:$0xff]  ;;  %v4529_v50 = vld [vmem:[#allocation29_spill] sm:$0xff] }
 0x560   :  { %v3264_v57 = vmul.f32 -1.442695, %v2030_v45  ;;  %v1987_v58 = vpop.f32.mrb[35].mxu0  ;;  %v2028_v59 = vpop.f32.mrb[35].mxu1  ;;  %v3266_v61 = vmul.f32 -1.442695, %v2032_v47 }
 0x561   :  { %v3265_v60 = vmul.f32 -1.442695, %v2031_v51  ;;  %v4530_v55 = vld [vmem:[#allocation30_spill] sm:$0xff] }
 0x562   :  { %3598 = vpow2.f32 %v3264_v57  ;;  %v4531_v57 = vld [vmem:[#allocation31_spill] sm:$0xff] }
 0x563   :  { %3600 = vpow2.f32 %v3265_v60 }
 0x564   :  { %3602 = vtanh.f32 %v2033_v54 }
 0x565   :  { %3604 = vpow2.f32 %v3266_v61 }
 0x56c   :  { %v3599_v63 = vpop.eup %3598 }
 0x56d   :  { %v2043_v1 = vadd.f32 1.0, %v3599_v63  ;;  %v3601_v2 = vpop.eup %3600 }
 0x56e   :  { %v2044_v4 = vadd.f32 1.0, %v3601_v2  ;;  %v3603_v5 = vpop.eup %3602 }
 0x56f   :  { %3606 = vrcp.f32 %v2043_v1  ;;  %v3605_v32 = vpop.eup %3604 }
 0x570   :  { %3608 = vrcp.f32 %v2044_v4  ;;  %v2045_v40 = vadd.f32 1.0, %v3605_v32 }
 0x572   :  { %3610 = vrcp.f32 %v2045_v40 }
 0x579   :  { %v3607_v44 = vpop.eup %3606 }
 0x57a   :  { %v2054_v38 = vmul.f32 %v3607_v44, %v3603_v5  ;;  %v3609_v39 = vpop.eup %3608 }
 0x57b   :  { %v2053_v41 = vmul.f32 %v3609_v39, %v4310_v37 }
 0x57c   :  { %v3611_v42 = vpop.eup %3610 }
 0x57d   :  { %v4352_v3 = vadd.f32 %v2054_v38, %v2053_v41 }
 0x57f   :  { %3612 = vtanh.f32 %v4352_v3 }
 0x589   :  { %v3613_v43 = vpop.eup %3612 }
 0x58a   :  { %v2057_v45 = vmul.f32 %v3613_v43, %v3611_v42 }
 0x58c   :  { %2061 = vst [vmem:[#allocation11 + $0x20] sm:$0xff] %v2057_v45  ;;  %v2069_v46 = vpack.c.bf16 %v2057_v45, %v2057_v45 }
 0x58e   :  { %2295 = vmatmul.mubr.bf16.vlgmr.msra.gmra.mrb[36].mxu0 %v2069_v46  ;;  %2336 = vmatmul.mubr.bf16.vlgmr.msra.gmra.mrb[36].mxu1 %v2069_v46 }
 0x58f   :  { %2577 = vmatpush1.bf16.msra.mxu0 %v4211_v8  ;;  %2618 = vmatpush1.bf16.msra.mxu1 %v4213_v12 }
 0x590   :  { %2578 = vmatprep.subr.bf16.mxu0 %v4219_v23  ;;  %2619 = vmatprep.subr.bf16.mxu1 %v4221_v31 }
 0x591   :  { %2608 = vmatprep.mubr.bf16.mxu0 %v4518_v30  ;;  %2649 = vmatprep.mubr.bf16.mxu1 %v4518_v30 }
 0x593   :  { %2579 = vmatpush1.bf16.msra.mxu0 %v4223_v15  ;;  %2620 = vmatpush1.bf16.msra.mxu1 %v4225_v14 }
 0x594   :  { %2580 = vmatprep.subr.bf16.mxu0 %v4231_v16  ;;  %2621 = vmatprep.subr.bf16.mxu1 %v4233_v18 }
 0x597   :  { %2581 = vmatpush1.bf16.msra.mxu0 %v4235_v17  ;;  %2622 = vmatpush1.bf16.msra.mxu1 %v4237_v0 }
 0x598   :  { %2582 = vmatprep.subr.bf16.mxu0 %v4243_v19  ;;  %2623 = vmatprep.subr.bf16.mxu1 %v4245_v33 }
 0x59b   :  { %2583 = vmatpush1.bf16.msra.mxu0 %v4247_v34  ;;  %2624 = vmatpush1.bf16.msra.mxu1 %v4249_v20 }
 0x59c   :  { %2584 = vmatprep.subr.bf16.mxu0 %v4255_v21  ;;  %2625 = vmatprep.subr.bf16.mxu1 %v4257_v24 }
 0x59f   :  { %2585 = vmatpush1.bf16.msra.mxu0 %v4259_v26  ;;  %2626 = vmatpush1.bf16.msra.mxu1 %v4261_v28 }
 0x5a0   :  { %2586 = vmatprep.subr.bf16.mxu0 %v4269_v29  ;;  %2627 = vmatprep.subr.bf16.mxu1 %v4273_v53 }
 0x5a3   :  { %2587 = vmatpush1.bf16.msra.mxu0 %v4267_v27  ;;  %2628 = vmatpush1.bf16.msra.mxu1 %v4271_v9 }
 0x5a4   :  { %2588 = vmatprep.subr.bf16.mxu0 %v4275_v25  ;;  %2629 = vmatprep.subr.bf16.mxu1 %v4278_v11 }
 0x5a7   :  { %2589 = vmatpush1.bf16.msra.mxu0 %v4283_v22  ;;  %2630 = vmatpush1.bf16.msra.mxu1 %v4285_v35 }
 0x5a8   :  { %2590 = vmatprep.subr.bf16.mxu0 %v4289_v10  ;;  %2631 = vmatprep.subr.bf16.mxu1 %v4291_v13 }
 0x5ab   :  { %2591 = vmatpush1.bf16.msra.mxu0 %v4295_v6  ;;  %2632 = vmatpush1.bf16.msra.mxu1 %v4297_v36 }
 0x5ac   :  { %2890 = vmatprep.subr.bf16.mxu0 %v4207_v62  ;;  %2931 = vmatprep.subr.bf16.mxu1 %v4209_v7 }
 0x661   :  { %v2296_v37 = vpop.f32.mrb[36].mxu0  ;;  %v2337_v47 = vpop.f32.mrb[36].mxu1 }
 0x662   :  { %v2344_v49 = vadd.f32 %v2296_v37, %v4528_v48  ;;  %v2346_v51 = vadd.f32 %v2337_v47, %v4529_v50  ;;  %v2298_v52 = vpop.f32.mrb[37].mxu0  ;;  %v2339_v54 = vpop.f32.mrb[37].mxu1 }
 0x663   :  { %v2345_v56 = vadd.f32 %v2298_v52, %v4530_v55  ;;  %v2347_v58 = vadd.f32 %v2339_v54, %v4531_v57  ;;  %v2300_v59 = vpop.f32.mrb[38].mxu0  ;;  %v2341_v60 = vpop.f32.mrb[38].mxu1  ;;  %v4536_v55 = vld [vmem:[#allocation36_spill] sm:$0xff]  ;;  %v4537_v57 = vld [vmem:[#allocation37_spill] sm:$0xff] }
 0x664   :  { %v3299_v61 = vmul.f32 -1.442695, %v2344_v49  ;;  %v2301_v63 = vpop.f32.mrb[39].mxu0  ;;  %v2342_v1 = vpop.f32.mrb[39].mxu1  ;;  %v3301_v7 = vmul.f32 -1.442695, %v2346_v51 }
 0x665   :  { %v3300_v62 = vmul.f32 -1.442695, %v2345_v56  ;;  %v4539_v1 = vld [vmem:[#allocation39_spill] sm:$0xff] }
 0x666   :  { %3614 = vpow2.f32 %v3299_v61  ;;  %v4538_v61 = vld [vmem:[#allocation38_spill] sm:$0xff] }
 0x667   :  { %3616 = vpow2.f32 %v3300_v62 }
 0x668   :  { %3618 = vtanh.f32 %v2347_v58 }
 0x669   :  { %3620 = vpow2.f32 %v3301_v7 }
 0x670   :  { %v3615_v2 = vpop.eup %3614 }
 0x671   :  { %v2357_v4 = vadd.f32 1.0, %v3615_v2  ;;  %v3617_v5 = vpop.eup %3616 }
 0x672   :  { %v2358_v32 = vadd.f32 1.0, %v3617_v5  ;;  %v3619_v44 = vpop.eup %3618 }
 0x673   :  { %3622 = vrcp.f32 %v2357_v4  ;;  %v3621_v38 = vpop.eup %3620 }
 0x674   :  { %3624 = vrcp.f32 %v2358_v32  ;;  %v2359_v42 = vadd.f32 1.0, %v3621_v38 }
 0x676   :  { %3626 = vrcp.f32 %v2359_v42 }
 0x67d   :  { %v3623_v39 = vpop.eup %3622 }
 0x67e   :  { %v2368_v40 = vmul.f32 %v3623_v39, %v3619_v44  ;;  %v3625_v41 = vpop.eup %3624 }
 0x67f   :  { %v2367_v43 = vmul.f32 %v3625_v41, %v4352_v3 }
 0x680   :  { %v3627_v46 = vpop.eup %3626 }
 0x681   :  { %v4394_v45 = vadd.f32 %v2368_v40, %v2367_v43 }
 0x683   :  { %3628 = vtanh.f32 %v4394_v45 }
 0x68d   :  { %v3629_v37 = vpop.eup %3628 }
 0x68e   :  { %v2371_v47 = vmul.f32 %v3629_v37, %v3627_v46 }
 0x690   :  { %2375 = vst [vmem:[#allocation11 + $0x28] sm:$0xff] %v2371_v47  ;;  %v2383_v48 = vpack.c.bf16 %v2371_v47, %v2371_v47 }
 0x692   :  { %2609 = vmatmul.mubr.bf16.vlgmr.msra.gmra.mrb[40].mxu0 %v2383_v48  ;;  %2650 = vmatmul.mubr.bf16.vlgmr.msra.gmra.mrb[40].mxu1 %v2383_v48 }
 0x693   :  { %2891 = vmatpush1.bf16.msra.mxu0 %v4211_v8  ;;  %2932 = vmatpush1.bf16.msra.mxu1 %v4213_v12  ;;  %v4532_v12 = vld [vmem:[#allocation32_spill] sm:$0xff] }
 0x694   :  { %2892 = vmatprep.subr.bf16.mxu0 %v4219_v23  ;;  %2933 = vmatprep.subr.bf16.mxu1 %v4221_v31  ;;  %v4533_v31 = vld [vmem:[#allocation33_spill] sm:$0xff] }
 0x695   :  { %2922 = vmatprep.mubr.bf16.mxu0 %v4518_v30  ;;  %2963 = vmatprep.mubr.bf16.mxu1 %v4518_v30 }
 0x697   :  { %2893 = vmatpush1.bf16.msra.mxu0 %v4223_v15  ;;  %2934 = vmatpush1.bf16.msra.mxu1 %v4225_v14 }
 0x698   :  { %2894 = vmatprep.subr.bf16.mxu0 %v4231_v16  ;;  %2935 = vmatprep.subr.bf16.mxu1 %v4233_v18  ;;  %v4534_v18 = vld [vmem:[#allocation34_spill] sm:$0xff] }
 0x69b   :  { %2895 = vmatpush1.bf16.msra.mxu0 %v4235_v17  ;;  %2936 = vmatpush1.bf16.msra.mxu1 %v4237_v0  ;;  %v4535_v0 = vld [vmem:[#allocation35_spill] sm:$0xff] }
 0x69c   :  { %2896 = vmatprep.subr.bf16.mxu0 %v4243_v19  ;;  %2937 = vmatprep.subr.bf16.mxu1 %v4245_v33 }
 0x69f   :  { %2897 = vmatpush1.bf16.msra.mxu0 %v4247_v34  ;;  %2938 = vmatpush1.bf16.msra.mxu1 %v4249_v20 }
 0x6a0   :  { %2898 = vmatprep.subr.bf16.mxu0 %v4255_v21  ;;  %2939 = vmatprep.subr.bf16.mxu1 %v4257_v24 }
 0x6a3   :  { %2899 = vmatpush1.bf16.msra.mxu0 %v4259_v26  ;;  %2940 = vmatpush1.bf16.msra.mxu1 %v4261_v28 }
 0x6a4   :  { %2900 = vmatprep.subr.bf16.mxu0 %v4269_v29  ;;  %2941 = vmatprep.subr.bf16.mxu1 %v4273_v53 }
 0x6a7   :  { %2901 = vmatpush1.bf16.msra.mxu0 %v4267_v27  ;;  %2942 = vmatpush1.bf16.msra.mxu1 %v4271_v9 }
 0x6a8   :  { %2902 = vmatprep.subr.bf16.mxu0 %v4275_v25  ;;  %2943 = vmatprep.subr.bf16.mxu1 %v4278_v11 }
 0x6ab   :  { %2903 = vmatpush1.bf16.msra.mxu0 %v4283_v22  ;;  %2944 = vmatpush1.bf16.msra.mxu1 %v4285_v35 }
 0x6ac   :  { %2904 = vmatprep.subr.bf16.mxu0 %v4289_v10  ;;  %2945 = vmatprep.subr.bf16.mxu1 %v4291_v13 }
 0x6af   :  { %2905 = vmatpush1.bf16.msra.mxu0 %v4295_v6  ;;  %2946 = vmatpush1.bf16.msra.mxu1 %v4297_v36 }
 0x765   :  { %v2610_v30 = vpop.f32.mrb[40].mxu0  ;;  %v2651_v8 = vpop.f32.mrb[40].mxu1 }
 0x766   :  { %v2658_v23 = vadd.f32 %v2610_v30, %v4532_v12  ;;  %v2660_v15 = vadd.f32 %v2651_v8, %v4533_v31  ;;  %v2612_v14 = vpop.f32.mrb[41].mxu0  ;;  %v2653_v16 = vpop.f32.mrb[41].mxu1 }
 0x767   :  { %v2659_v17 = vadd.f32 %v2612_v14, %v4534_v18  ;;  %v2661_v19 = vadd.f32 %v2653_v16, %v4535_v0  ;;  %v2614_v33 = vpop.f32.mrb[42].mxu0  ;;  %v2655_v34 = vpop.f32.mrb[42].mxu1 }
 0x768   :  { %v3334_v20 = vmul.f32 -1.442695, %v2658_v23  ;;  %v2615_v21 = vpop.f32.mrb[43].mxu0  ;;  %v2656_v24 = vpop.f32.mrb[43].mxu1  ;;  %v3336_v28 = vmul.f32 -1.442695, %v2660_v15 }
 0x769   :  { %v3335_v26 = vmul.f32 -1.442695, %v2659_v17 }
 0x76a   :  { %3630 = vpow2.f32 %v3334_v20 }
 0x76b   :  { %3632 = vpow2.f32 %v3335_v26 }
 0x76c   :  { %3634 = vtanh.f32 %v2661_v19 }
 0x76d   :  { %3636 = vpow2.f32 %v3336_v28 }
 0x774   :  { %v3631_v27 = vpop.eup %3630 }
 0x775   :  { %v2671_v29 = vadd.f32 1.0, %v3631_v27  ;;  %v3633_v9 = vpop.eup %3632 }
 0x776   :  { %v2672_v53 = vadd.f32 1.0, %v3633_v9  ;;  %v3635_v25 = vpop.eup %3634 }
 0x777   :  { %3638 = vrcp.f32 %v2671_v29  ;;  %v3637_v11 = vpop.eup %3636 }
 0x778   :  { %3640 = vrcp.f32 %v2672_v53  ;;  %v2673_v13 = vadd.f32 1.0, %v3637_v11 }
 0x77a   :  { %3642 = vrcp.f32 %v2673_v13 }
 0x781   :  { %v3639_v22 = vpop.eup %3638 }
 0x782   :  { %v2682_v35 = vmul.f32 %v3639_v22, %v3635_v25  ;;  %v3641_v10 = vpop.eup %3640 }
 0x783   :  { %v2681_v6 = vmul.f32 %v3641_v10, %v4394_v45 }
 0x784   :  { %v3643_v3 = vpop.eup %3642 }
 0x785   :  { %v2683_v36 = vadd.f32 %v2682_v35, %v2681_v6 }
 0x787   :  { %3644 = vtanh.f32 %v2683_v36 }
 0x791   :  { %v3645_v49 = vpop.eup %3644 }
 0x792   :  { %v2685_v50 = vmul.f32 %v3645_v49, %v3643_v3 }
 0x794   :  { %2689 = vst [vmem:[#allocation11 + $0x30] sm:$0xff] %v2685_v50  ;;  %v2697_v51 = vpack.c.bf16 %v2685_v50, %v2685_v50 }
 0x796   :  { %2923 = vmatmul.mubr.bf16.vlgmr.msra.gmra.mrb[44].mxu0 %v2697_v51  ;;  %2964 = vmatmul.mubr.bf16.vlgmr.msra.gmra.mrb[44].mxu1 %v2697_v51 }
 0x869   :  { %v2924_v52 = vpop.f32.mrb[44].mxu0  ;;  %v2965_v54 = vpop.f32.mrb[44].mxu1 }
 0x86a   :  { %v2972_v56 = vadd.f32 %v2924_v52, %v4536_v55  ;;  %v2974_v58 = vadd.f32 %v2965_v54, %v4537_v57  ;;  %v2926_v59 = vpop.f32.mrb[45].mxu0  ;;  %v2967_v60 = vpop.f32.mrb[45].mxu1 }
 0x86b   :  { %v2973_v63 = vadd.f32 %v2926_v59, %v4538_v61  ;;  %v2975_v62 = vadd.f32 %v2967_v60, %v4539_v1  ;;  %v2928_v7 = vpop.f32.mrb[46].mxu0  ;;  %v2969_v2 = vpop.f32.mrb[46].mxu1 }
 0x86c   :  { %v3369_v4 = vmul.f32 -1.442695, %v2972_v56  ;;  %v2929_v5 = vpop.f32.mrb[47].mxu0  ;;  %v2970_v32 = vpop.f32.mrb[47].mxu1  ;;  %v3371_v38 = vmul.f32 -1.442695, %v2974_v58 }
 0x86d   :  { %v3370_v44 = vmul.f32 -1.442695, %v2973_v63 }
 0x86e   :  { %3646 = vpow2.f32 %v3369_v4 }
 0x86f   :  { %3648 = vpow2.f32 %v3370_v44 }
 0x870   :  { %3650 = vtanh.f32 %v2975_v62 }
 0x871   :  { %3652 = vpow2.f32 %v3371_v38 }
 0x878   :  { %v3647_v39 = vpop.eup %3646 }
 0x879   :  { %v2985_v40 = vadd.f32 1.0, %v3647_v39  ;;  %v3649_v41 = vpop.eup %3648 }
 0x87a   :  { %v2986_v42 = vadd.f32 1.0, %v3649_v41  ;;  %v3651_v43 = vpop.eup %3650 }
 0x87b   :  { %3654 = vrcp.f32 %v2985_v40  ;;  %v3653_v45 = vpop.eup %3652 }
 0x87c   :  { %3656 = vrcp.f32 %v2986_v42  ;;  %v2987_v48 = vadd.f32 1.0, %v3653_v45 }
 0x87e   :  { %3658 = vrcp.f32 %v2987_v48 }
 0x885   :  { %v3655_v46 = vpop.eup %3654 }
 0x886   :  { %v2996_v37 = vmul.f32 %v3655_v46, %v3651_v43  ;;  %v3657_v47 = vpop.eup %3656 }
 0x887   :  { %v2995_v30 = vmul.f32 %v3657_v47, %v2683_v36 }
 0x888   :  { %v3659_v12 = vpop.eup %3658 }
 0x889   :  { %v2997_v8 = vadd.f32 %v2996_v37, %v2995_v30 }
 0x88b   :  { %3010 = vst [vmem:[#allocation14] sm:$0xff] %v2997_v8  ;;  %3660 = vtanh.f32 %v2997_v8 }
 0x895   :  { %v3661_v23 = vpop.eup %3660 }
 0x896   :  { %v2999_v31 = vmul.f32 %v3661_v23, %v3659_v12 }
 0x898   :  { %3003 = vst [vmem:[#allocation11 + $0x38] sm:$0xff] %v2999_v31  ;;  %3008 = vst [vmem:[#allocation12] sm:$0xff] %v2999_v31 }
 0x899   :  { %3739 = shalt.err (!%p3736_p0)
}
 0x89a   :  { %s3740_s20 = scalar_lea.hbm %s4493_s5, 128 }
 0x89b   :  { %p3741_p1 = scmp.ne.s32.totalorder %s4493_s5, %s3740_s20  ;;  %p3744_p2 = scmp.lt.u32.totalorder %s3740_s20, %s4493_s5 }
 0x89d   :  { %p3746_p3 = pnand %p3744_p2, %p3741_p1 }
 0x89f   :  { %3749 = shalt.err (!%p3746_p3)
}
 0x8a0   :  { %3032 = dma.vmem_to_hbm [thread:$0]  %s3030_s8, 128, %s4493_s5, [#allocation13]  }
 0x8a1   :  { %s3750_s26 = scalar_lea.vmem %s4438_s14, 1024  ;;  %p3755_p5 = scmp.lt.s32.totalorder %s4438_s14, %s4438_s14 }
 0x8a2   :  { %p3751_p4 = scmp.ne.s32.totalorder %s4438_s14, %s3750_s26  ;;  %p3756_p6 = scmp.lt.s32.totalorder %s3750_s26, %s3750_s26 }
 0x8a4   :  { %p3757_p7 = por %p3756_p6, %p3755_p5 }
 0x8a6   :  { %p3758_p8 = pnand %p3757_p7, %p3751_p4 }
 0x8a8   :  { %3761 = shalt.err (!%p3758_p8)
}
 0x8a9   :  { %s3762_s29 = scalar_lea.hbm %s4492_s4, 1024 }
 0x8aa   :  { %p3763_p9 = scmp.ne.s32.totalorder %s4492_s4, %s3762_s29  ;;  %p3766_p10 = scmp.lt.u32.totalorder %s3762_s29, %s4492_s4 }
 0x8ac   :  { %p3768_p11 = pnand %p3766_p10, %p3763_p9 }
 0x8ae   :  { %3771 = shalt.err (!%p3768_p11)
}
 0x8af   :  { %s3814_s5 = smov 128   ;;  %s3815_s0 = smov 8  }
 0x8b0   :  { %3022 = dma.vmem_to_hbm [thread:$0]  %s4438_s14, 1024, %s4492_s4, [#allocation7], %s3814_s5, %s3814_s5, %s3815_s0  }
 0x8b1   :  { %s3772_s7 = scalar_lea.vmem %s4440_s16, 128  ;;  %p3777_p13 = scmp.lt.s32.totalorder %s4440_s16, %s4440_s16 }
 0x8b2   :  { %p3773_p12 = scmp.ne.s32.totalorder %s4440_s16, %s3772_s7  ;;  %p3778_p0 = scmp.lt.s32.totalorder %s3772_s7, %s3772_s7 }
 0x8b4   :  { %p3779_p1 = por %p3778_p0, %p3777_p13 }
 0x8b6   :  { %p3780_p2 = pnand %p3779_p1, %p3773_p12 }
 0x8b8   :  { %3783 = shalt.err (!%p3780_p2)
}
 0x8b9   :  { %s3784_s13 = scalar_lea.hbm %s4494_s6, 128 }
 0x8ba   :  { %p3785_p3 = scmp.ne.s32.totalorder %s4494_s6, %s3784_s13  ;;  %p3788_p4 = scmp.lt.u32.totalorder %s3784_s13, %s4494_s6 }
 0x8bc   :  { %p3790_p5 = pnand %p3788_p4, %p3785_p3 }
 0x8be   :  { %3793 = shalt.err (!%p3790_p5)
}
 0x8bf   :  { %3042 = dma.vmem_to_hbm [thread:$0]  %s4440_s16, 128, %s4494_s6, [#allocation13]  }
 0x8c0   :  { %3798 = dma.done.wait [#allocation7], 1024  }
 0x8c1   :  { %3799 = vsyncadd [#allocation7], 4294966272 }
 0x8c2   :  { %3800 = dma.done.wait [#allocation13], 256  }
 0x8c3   :  { %3801 = vsyncadd [#allocation13], 4294967040 }
 0x8c4   :  { %3052 = vsyncpa [#allocation6], 1 }
 0x8c5   :  { %3053 = vsyncpa [#allocation9], 1 }
 0x8c6   :  { %3054 = vsyncpa [#allocation7], 1 }
 0x8c7   :  { %3055 = vsyncpa [#allocation13], 1 }

</bundles_post_ra>
